<compile_context>
chip_gen: v7x
topology: tpu7x:2x2x1
jax: 0.10.0
libtpu: 0.0.40
codegen_flags: <defaults>
</compile_context>

<pallas_src>
import functools

import jax
import jax.numpy as jnp
from jax.experimental import pallas as pl
from jax.experimental.pallas import tpu as pltpu


def _fused_policy_kernel(x_ref, w1_ref, b1_ref, wih_ref, bg_ref, whh_ref,
                         whead_ref, bhead_ref, out_ref, pg_sc, hall_sc, *, num_steps):
    """Whole MLPLSTMPolicy forward (both branches) in one grid step.

    x_ref:     (N, D_in)     flattened batch*time inputs, rows ordered b-major (b*T + t)
    w1_ref:    (D_in, 2H)    [pi_fc | vf_fc] weight^T, lane-stacked
    b1_ref:    (1, 2H)       [pi_fc_b | vf_fc_b]
    wih_ref:   (2H, 8H)      block-diagonal W_ih^T, columns [i|i, f|f, o|o, g|g] (pi|vf per gate)
    bg_ref:    (1, 8H)       b_ih + b_hh, same column order
    whh_ref:   (2H, 8H)      block-diagonal W_hh^T, same column order
    whead_ref: (2H, Apad)    fused head: rows :H -> mean cols, rows H: -> value col, zero-padded
    bhead_ref: (1, Apad)     fused head bias
    out_ref:   (N, Apad)     [mean | value | pad] per (b, t) row, batch-major
    pg_sc:     (B, T, 8H)    VMEM scratch: pre-gates (input projection + bias) per timestep
    hall_sc:   (B, T, 2H)    VMEM scratch: hidden states collected across the loop
    """
    N = x_ref.shape[0]
    T = num_steps
    B = N // T
    H2 = whh_ref.shape[0]          # 2*H  (pi | vf hidden, lane-stacked)

    # --- off-the-serial-path work: fc+tanh and hoisted LSTM input projection (one GEMM each) ---
    h1 = jnp.tanh(
        jnp.dot(x_ref[...], w1_ref[...], preferred_element_type=jnp.float32) + b1_ref[...]
    )                                                                           # (N, 2H)
    pre_gates = (
        jnp.dot(h1, wih_ref[...], preferred_element_type=jnp.float32) + bg_ref[...]
    )                                                                           # (N, 8H)
    for b in range(B):  # batch-major rows -> (B, T, 8H) scratch; no transpose anywhere
        pg_sc[b, :, :] = pre_gates[b * T:(b + 1) * T, :]

    whh = whh_ref[...]

    # --- serial recurrence: only h @ Whh^T + gate math stays on the critical path ---
    h = jnp.zeros((B, H2), jnp.float32)
    c = jnp.zeros((B, H2), jnp.float32)
    for t in range(T):                               # T=8: fully unrolled, (h, c) live in vregs
        gates = pg_sc[:, t, :] + jnp.dot(h, whh, preferred_element_type=jnp.float32)  # (B, 8H)
        sig = 0.5 * (jnp.tanh(0.5 * gates[:, : 3 * H2]) + 1.0)   # sigmoid via a single EUP tanh
        i_g = sig[:, 0 * H2:1 * H2]
        f_g = sig[:, 1 * H2:2 * H2]
        o_g = sig[:, 2 * H2:3 * H2]
        g_g = jnp.tanh(gates[:, 3 * H2:])
        c = f_g * c + i_g * g_g
        h = o_g * jnp.tanh(c)
        hall_sc[:, t, :] = h                         # store-only; not read back until after loop

    # --- output head hoisted out of the recurrence: one lane-dense GEMM per batch row ---
    for b in range(B):
        hb = jnp.tanh(hall_sc[b, :, :])                                         # (T, 2H)
        out_ref[b * T:(b + 1) * T, :] = (
            jnp.dot(hb, whead_ref[...], preferred_element_type=jnp.float32) + bhead_ref[...]
        ).astype(out_ref.dtype)


def prepare_params(params):
    """One-time weight plumbing (run OFF the hot path): gate reorder [i,f,g,o]->[i,f,o,g],
    pi/vf lane stacking, block-diagonal recurrent matrices, fused b_ih+b_hh, padded fused head."""
    H = params["pi_whh"].shape[1]
    A = params["mean_w"].shape[0]
    H2 = 2 * H
    G = 8 * H
    a_pad = max(128, ((A + 1 + 127) // 128) * 128)   # lane-dense output width

    gate_order = (0, 1, 3, 2)                        # torch rows [i, f, g, o] -> cols [i, f, o, g]

    def block(w_pi, w_vf):
        # w_*: (4H, K); result (2K, 8H): rows :K act on pi features, rows K: on vf features.
        K = w_pi.shape[1]
        out = jnp.zeros((2 * K, G), jnp.float32)
        for col, gate in enumerate(gate_order):
            c0 = col * H2
            out = out.at[:K, c0:c0 + H].set(w_pi[gate * H:(gate + 1) * H].T)
            out = out.at[K:, c0 + H:c0 + H2].set(w_vf[gate * H:(gate + 1) * H].T)
        return out

    def bias(b_pi, b_vf):
        parts = []
        for gate in gate_order:
            parts.append(b_pi[gate * H:(gate + 1) * H])
            parts.append(b_vf[gate * H:(gate + 1) * H])
        return jnp.concatenate(parts).reshape(1, G)

    w1 = jnp.concatenate([params["pi_fc_w"].T, params["vf_fc_w"].T], axis=1)     # (D_in, 2H)
    b1 = jnp.concatenate([params["pi_fc_b"], params["vf_fc_b"]]).reshape(1, H2)

    wih = block(params["pi_wih"], params["vf_wih"])                              # (2H, 8H)
    whh = block(params["pi_whh"], params["vf_whh"])                              # (2H, 8H)
    bg = bias(params["pi_bih"] + params["pi_bhh"],
              params["vf_bih"] + params["vf_bhh"])                               # (1, 8H)

    whead = jnp.zeros((H2, a_pad), jnp.float32)
    whead = whead.at[:H, :A].set(params["mean_w"].T)          # mean head reads pi hidden lanes
    whead = whead.at[H:, A:A + 1].set(params["value_w"].T)    # value head reads vf hidden lanes
    bhead = jnp.zeros((1, a_pad), jnp.float32)
    bhead = bhead.at[0, :A].set(params["mean_b"])
    bhead = bhead.at[0, A:A + 1].set(params["value_b"])

    return {"w1": w1, "b1": b1, "wih": wih, "bg": bg, "whh": whh,
            "whead": whead, "bhead": bhead}


@functools.partial(jax.jit, static_argnames=("num_steps", "num_actions"))
def mlp_lstm_policy_forward(x, prepped, num_steps=8, num_actions=4):
    """x: (N, D_in), N = batch * num_steps, rows ordered batch-major [b0t0..b0t(T-1), b1t0..].

    Returns (action, value): action == mean (eval mode), value: (N, 1).
    """
    N, D_in = x.shape
    T = num_steps
    assert N % T == 0, "rows must be batch-major with N a multiple of num_steps"
    B = N // T
    H2 = prepped["whh"].shape[0]
    G = prepped["whh"].shape[1]
    a_pad = prepped["whead"].shape[1]

    out = pl.pallas_call(
        functools.partial(_fused_policy_kernel, num_steps=T),
        out_shape=jax.ShapeDtypeStruct((N, a_pad), jnp.float32),
        grid=(1,),
        in_specs=[
            pl.BlockSpec((N, D_in), lambda i: (0, 0)),
            pl.BlockSpec((D_in, H2), lambda i: (0, 0)),
            pl.BlockSpec((1, H2), lambda i: (0, 0)),
            pl.BlockSpec((H2, G), lambda i: (0, 0)),
            pl.BlockSpec((1, G), lambda i: (0, 0)),
            pl.BlockSpec((H2, G), lambda i: (0, 0)),
            pl.BlockSpec((H2, a_pad), lambda i: (0, 0)),
            pl.BlockSpec((1, a_pad), lambda i: (0, 0)),
        ],
        out_specs=pl.BlockSpec((N, a_pad), lambda i: (0, 0)),
        scratch_shapes=[
            pltpu.VMEM((B, T, G), jnp.float32),
            pltpu.VMEM((B, T, H2), jnp.float32),
        ],
        compiler_params=pltpu.CompilerParams(dimension_semantics=("arbitrary",)),
    )(x, prepped["w1"], prepped["b1"], prepped["wih"], prepped["bg"],
      prepped["whh"], prepped["whead"], prepped["bhead"])

    mean = out[:, :num_actions]
    value = out[:, num_actions:num_actions + 1]
    # TODO(synk): training-mode action = Normal(mean, exp(log_std)).sample() needs an RNG key;
    #             eval-mode (self.training == False) returns the mean, which is what we do here.
    # TODO(synk): carrying self.hidden across calls is stateful; each call uses zero (h, c)
    #             like the module's first invocation.
    action = mean
    return action, value


def _reference_forward(x, params, num_steps):
    """Pure-JAX reference matching the PyTorch module (eval mode, zero LSTM init state)."""

    def lstm(seq, wih, whh, bih, bhh):
        Bb, _, _ = seq.shape
        H = whh.shape[1]

        def step(carry, x_t):
            h, c = carry
            gates = x_t @ wih.T + bih + h @ whh.T + bhh
            i_g = jax.nn.sigmoid(gates[:, 0 * H:1 * H])
            f_g = jax.nn.sigmoid(gates[:, 1 * H:2 * H])
            g_g = jnp.tanh(gates[:, 2 * H:3 * H])
            o_g = jax.nn.sigmoid(gates[:, 3 * H:4 * H])
            c_new = f_g * c + i_g * g_g
            h_new = o_g * jnp.tanh(c_new)
            return (h_new, c_new), h_new

        init = (jnp.zeros((Bb, H), seq.dtype), jnp.zeros((Bb, H), seq.dtype))
        _, out = jax.lax.scan(step, init, jnp.transpose(seq, (1, 0, 2)))
        return jnp.transpose(out, (1, 0, 2))

    N = x.shape[0]
    T = num_steps
    B = N // T

    pi_h1 = jnp.tanh(x @ params["pi_fc_w"].T + params["pi_fc_b"])
    pi_h2 = lstm(pi_h1.reshape(B, T, -1), params["pi_wih"], params["pi_whh"],
                 params["pi_bih"], params["pi_bhh"]).reshape(N, -1)
    pi_h2 = jnp.tanh(pi_h2)
    mean = pi_h2 @ params["mean_w"].T + params["mean_b"]

    vf_h1 = jnp.tanh(x @ params["vf_fc_w"].T + params["vf_fc_b"])
    vf_h2 = lstm(vf_h1.reshape(B, T, -1), params["vf_wih"], params["vf_whh"],
                 params["vf_bih"], params["vf_bhh"]).reshape(N, -1)
    vf_h2 = jnp.tanh(vf_h2)
    value = vf_h2 @ params["value_w"].T + params["value_b"]
    return mean, value


if __name__ == "__main__":
    # Shapes implied by the module: input_shape=(16,), output_shape=(4,), hidden=64, num_steps=8.
    B, T, D_IN, H, A = 2, 8, 16, 64, 4
    N = B * T

    key = jax.random.PRNGKey(0)
    ks = jax.random.split(key, 17)

    bound_fc = 1.0 / (D_IN ** 0.5)
    bound_h = 1.0 / (H ** 0.5)

    params = {
        "pi_fc_w": jax.random.uniform(ks[0], (H, D_IN), jnp.float32, -bound_fc, bound_fc),
        "pi_fc_b": jax.random.uniform(ks[1], (H,), jnp.float32, -bound_fc, bound_fc),
        "pi_wih": jax.random.uniform(ks[2], (4 * H, H), jnp.float32, -bound_h, bound_h),
        "pi_whh": jax.random.uniform(ks[3], (4 * H, H), jnp.float32, -bound_h, bound_h),
        "pi_bih": jax.random.uniform(ks[4], (4 * H,), jnp.float32, -bound_h, bound_h),
        "pi_bhh": jax.random.uniform(ks[5], (4 * H,), jnp.float32, -bound_h, bound_h),
        "mean_w": jax.random.uniform(ks[6], (A, H), jnp.float32, -bound_h, bound_h),
        "mean_b": jax.random.uniform(ks[7], (A,), jnp.float32, -bound_h, bound_h),
        "vf_fc_w": jax.random.uniform(ks[8], (H, D_IN), jnp.float32, -bound_fc, bound_fc),
        "vf_fc_b": jax.random.uniform(ks[9], (H,), jnp.float32, -bound_fc, bound_fc),
        "vf_wih": jax.random.uniform(ks[10], (4 * H, H), jnp.float32, -bound_h, bound_h),
        "vf_whh": jax.random.uniform(ks[11], (4 * H, H), jnp.float32, -bound_h, bound_h),
        "vf_bih": jax.random.uniform(ks[12], (4 * H,), jnp.float32, -bound_h, bound_h),
        "vf_bhh": jax.random.uniform(ks[13], (4 * H,), jnp.float32, -bound_h, bound_h),
        "value_w": jax.random.uniform(ks[14], (1, H), jnp.float32, -bound_h, bound_h),
        "value_b": jax.random.uniform(ks[15], (1,), jnp.float32, -bound_h, bound_h),
        "log_std": jnp.zeros((A,), jnp.float32),  # log_std_head (unused: eval-mode action == mean)
    }

    x = jax.random.normal(ks[16], (N, D_IN), dtype=jnp.float32)

    # One-time layout prep, off the hot path.
    prepped = jax.tree_util.tree_map(jax.block_until_ready, prepare_params(params))

    action, value = mlp_lstm_policy_forward(x, prepped, num_steps=T, num_actions=A)
    action = jax.block_until_ready(action)
    value = jax.block_until_ready(value)

    ref_action, ref_value = _reference_forward(x, params, T)

    assert action.shape == (N, A)
    assert value.shape == (N, 1)
    assert jnp.allclose(action, ref_action, atol=1e-4, rtol=1e-4), "action mismatch vs reference"
    assert jnp.allclose(value, ref_value, atol=1e-4, rtol=1e-4), "value mismatch vs reference"

    print("KERNEL_OK")
</pallas_src>

<mosaic_0001>
module attributes {stable_mosaic.version = 11 : i64} {
  func.func @_fused_policy_kernel(%arg0: i32, %arg1: memref<16x16xf32, #tpu.memory_space<vmem>>, %arg2: memref<16x128xf32, #tpu.memory_space<vmem>>, %arg3: memref<1x128xf32, #tpu.memory_space<vmem>>, %arg4: memref<128x512xf32, #tpu.memory_space<vmem>>, %arg5: memref<1x512xf32, #tpu.memory_space<vmem>>, %arg6: memref<128x512xf32, #tpu.memory_space<vmem>>, %arg7: memref<128x128xf32, #tpu.memory_space<vmem>>, %arg8: memref<1x128xf32, #tpu.memory_space<vmem>>, %arg9: memref<16x128xf32, #tpu.memory_space<vmem>>, %arg10: memref<2x8x512xf32, #tpu.memory_space<vmem>>, %arg11: memref<2x8x128xf32, #tpu.memory_space<vmem>>) attributes {dimension_semantics = [#tpu.dimension_semantics<arbitrary>], iteration_bounds = array<i64: 1>, scalar_prefetch = 0 : i64, scratch_operands = 2 : i64, tpu.core_type = #tpu.core_type<tc>, window_params = [{pipeline_mode = #tpu.pipeline_mode<synchronous>, transform_indices = @transform_0, window_bounds = array<i64: 16, 16>}, {pipeline_mode = #tpu.pipeline_mode<synchronous>, transform_indices = @transform_1, window_bounds = array<i64: 16, 128>}, {pipeline_mode = #tpu.pipeline_mode<synchronous>, transform_indices = @transform_2, window_bounds = array<i64: 1, 128>}, {pipeline_mode = #tpu.pipeline_mode<synchronous>, transform_indices = @transform_3, window_bounds = array<i64: 128, 512>}, {pipeline_mode = #tpu.pipeline_mode<synchronous>, transform_indices = @transform_4, window_bounds = array<i64: 1, 512>}, {pipeline_mode = #tpu.pipeline_mode<synchronous>, transform_indices = @transform_5, window_bounds = array<i64: 128, 512>}, {pipeline_mode = #tpu.pipeline_mode<synchronous>, transform_indices = @transform_6, window_bounds = array<i64: 128, 128>}, {pipeline_mode = #tpu.pipeline_mode<synchronous>, transform_indices = @transform_7, window_bounds = array<i64: 1, 128>}, {pipeline_mode = #tpu.pipeline_mode<synchronous>, transform_indices = @transform_8, window_bounds = array<i64: 16, 128>}]} {
    %c0 = arith.constant 0 : index
    %c0_0 = arith.constant 0 : index
    %0 = vector.load %arg1[%c0, %c0_0] : memref<16x16xf32, #tpu.memory_space<vmem>>, vector<16x16xf32>
    %c0_1 = arith.constant 0 : index
    %c0_2 = arith.constant 0 : index
    %1 = vector.load %arg2[%c0_1, %c0_2] : memref<16x128xf32, #tpu.memory_space<vmem>>, vector<16x128xf32>
    %cst = arith.constant dense<0.000000e+00> : vector<16x128xf32>
    %2 = tpu.matmul %0, %1, %cst {dimension_numbers = #tpu.dot_dimension_numbers<[1], [0], [0], [1], [0, 0, 1, 1], [], []>} : vector<16x16xf32>, vector<16x128xf32>, vector<16x128xf32> -> vector<16x128xf32>
    %c0_3 = arith.constant 0 : index
    %c0_4 = arith.constant 0 : index
    %3 = vector.load %arg3[%c0_3, %c0_4] : memref<1x128xf32, #tpu.memory_space<vmem>>, vector<1x128xf32>
    %4 = vector.broadcast %3 : vector<1x128xf32> to vector<16x128xf32>
    %5 = arith.addf %2, %4 : vector<16x128xf32>
    %6 = math.tanh %5 : vector<16x128xf32>
    %c0_5 = arith.constant 0 : index
    %c0_6 = arith.constant 0 : index
    %7 = vector.load %arg4[%c0_5, %c0_6] : memref<128x512xf32, #tpu.memory_space<vmem>>, vector<128x512xf32>
    %cst_7 = arith.constant dense<0.000000e+00> : vector<16x512xf32>
    %8 = tpu.matmul %6, %7, %cst_7 {dimension_numbers = #tpu.dot_dimension_numbers<[1], [0], [0], [1], [0, 0, 1, 1], [], []>} : vector<16x128xf32>, vector<128x512xf32>, vector<16x512xf32> -> vector<16x512xf32>
    %c0_8 = arith.constant 0 : index
    %c0_9 = arith.constant 0 : index
    %9 = vector.load %arg5[%c0_8, %c0_9] : memref<1x512xf32, #tpu.memory_space<vmem>>, vector<1x512xf32>
    %10 = vector.broadcast %9 : vector<1x512xf32> to vector<16x512xf32>
    %11 = arith.addf %8, %10 : vector<16x512xf32>
    %12 = vector.extract_strided_slice %11 {offsets = [0, 0], sizes = [8, 512], strides = [1, 1]} : vector<16x512xf32> to vector<8x512xf32>
    %c0_10 = arith.constant 0 : index
    %c0_11 = arith.constant 0 : index
    %c0_12 = arith.constant 0 : index
    %13 = vector.load %arg10[%c0_10, %c0_11, %c0_12] : memref<2x8x512xf32, #tpu.memory_space<vmem>>, vector<1x8x512xf32>
    %14 = vector.shape_cast %13 : vector<1x8x512xf32> to vector<8x512xf32>
    %15 = vector.shape_cast %12 : vector<8x512xf32> to vector<1x8x512xf32>
    tpu.vector_store %arg10[%c0_10, %c0_11, %c0_12], %15 {strides = array<i32>} : memref<2x8x512xf32, #tpu.memory_space<vmem>>, vector<1x8x512xf32>,
    %16 = vector.extract_strided_slice %11 {offsets = [8, 0], sizes = [8, 512], strides = [1, 1]} : vector<16x512xf32> to vector<8x512xf32>
    %c1 = arith.constant 1 : index
    %c0_13 = arith.constant 0 : index
    %c0_14 = arith.constant 0 : index
    %17 = vector.load %arg10[%c1, %c0_13, %c0_14] : memref<2x8x512xf32, #tpu.memory_space<vmem>>, vector<1x8x512xf32>
    %18 = vector.shape_cast %17 : vector<1x8x512xf32> to vector<8x512xf32>
    %19 = vector.shape_cast %16 : vector<8x512xf32> to vector<1x8x512xf32>
    tpu.vector_store %arg10[%c1, %c0_13, %c0_14], %19 {strides = array<i32>} : memref<2x8x512xf32, #tpu.memory_space<vmem>>, vector<1x8x512xf32>,
    %c0_15 = arith.constant 0 : index
    %c0_16 = arith.constant 0 : index
    %20 = vector.load %arg6[%c0_15, %c0_16] : memref<128x512xf32, #tpu.memory_space<vmem>>, vector<128x512xf32>
    %cst_17 = arith.constant 0.000000e+00 : f32
    %21 = vector.broadcast %cst_17 : f32 to vector<2x128xf32>
    %cst_18 = arith.constant 0.000000e+00 : f32
    %22 = vector.broadcast %cst_18 : f32 to vector<2x128xf32>
    %c0_19 = arith.constant 0 : index
    %c0_20 = arith.constant 0 : index
    %c0_21 = arith.constant 0 : index
    %23 = vector.load %arg10[%c0_19, %c0_20, %c0_21] : memref<2x8x512xf32, #tpu.memory_space<vmem>>, vector<2x1x512xf32>
    %24 = vector.shape_cast %23 : vector<2x1x512xf32> to vector<2x512xf32>
    %cst_22 = arith.constant dense<0.000000e+00> : vector<2x512xf32>
    %25 = tpu.matmul %21, %20, %cst_22 {dimension_numbers = #tpu.dot_dimension_numbers<[1], [0], [0], [1], [0, 0, 1, 1], [], []>} : vector<2x128xf32>, vector<128x512xf32>, vector<2x512xf32> -> vector<2x512xf32>
    %26 = arith.addf %24, %25 : vector<2x512xf32>
    %27 = vector.extract_strided_slice %26 {offsets = [0, 0], sizes = [2, 384], strides = [1, 1]} : vector<2x512xf32> to vector<2x384xf32>
    %cst_23 = arith.constant 5.000000e-01 : f32
    %28 = vector.broadcast %cst_23 : f32 to vector<2x384xf32>
    %29 = arith.mulf %28, %27 : vector<2x384xf32>
    %30 = math.tanh %29 : vector<2x384xf32>
    %cst_24 = arith.constant 1.000000e+00 : f32
    %31 = vector.broadcast %cst_24 : f32 to vector<2x384xf32>
    %32 = arith.addf %30, %31 : vector<2x384xf32>
    %cst_25 = arith.constant 5.000000e-01 : f32
    %33 = vector.broadcast %cst_25 : f32 to vector<2x384xf32>
    %34 = arith.mulf %33, %32 : vector<2x384xf32>
    %35 = vector.extract_strided_slice %34 {offsets = [0, 0], sizes = [2, 128], strides = [1, 1]} : vector<2x384xf32> to vector<2x128xf32>
    %36 = vector.extract_strided_slice %34 {offsets = [0, 128], sizes = [2, 128], strides = [1, 1]} : vector<2x384xf32> to vector<2x128xf32>
    %37 = vector.extract_strided_slice %34 {offsets = [0, 256], sizes = [2, 128], strides = [1, 1]} : vector<2x384xf32> to vector<2x128xf32>
    %38 = vector.extract_strided_slice %26 {offsets = [0, 384], sizes = [2, 128], strides = [1, 1]} : vector<2x512xf32> to vector<2x128xf32>
    %39 = math.tanh %38 : vector<2x128xf32>
    %40 = arith.mulf %36, %22 : vector<2x128xf32>
    %41 = arith.mulf %35, %39 : vector<2x128xf32>
    %42 = arith.addf %40, %41 : vector<2x128xf32>
    %43 = math.tanh %42 : vector<2x128xf32>
    %44 = arith.mulf %37, %43 : vector<2x128xf32>
    %c0_26 = arith.constant 0 : index
    %c0_27 = arith.constant 0 : index
    %c0_28 = arith.constant 0 : index
    %45 = vector.load %arg11[%c0_26, %c0_27, %c0_28] : memref<2x8x128xf32, #tpu.memory_space<vmem>>, vector<2x1x128xf32>
    %46 = vector.shape_cast %45 : vector<2x1x128xf32> to vector<2x128xf32>
    %47 = vector.shape_cast %44 : vector<2x128xf32> to vector<2x1x128xf32>
    tpu.vector_store %arg11[%c0_26, %c0_27, %c0_28], %47 {strides = array<i32>} : memref<2x8x128xf32, #tpu.memory_space<vmem>>, vector<2x1x128xf32>,
    %c0_29 = arith.constant 0 : index
    %c1_30 = arith.constant 1 : index
    %c0_31 = arith.constant 0 : index
    %48 = vector.load %arg10[%c0_29, %c1_30, %c0_31] : memref<2x8x512xf32, #tpu.memory_space<vmem>>, vector<2x1x512xf32>
    %49 = vector.shape_cast %48 : vector<2x1x512xf32> to vector<2x512xf32>
    %cst_32 = arith.constant dense<0.000000e+00> : vector<2x512xf32>
    %50 = tpu.matmul %44, %20, %cst_32 {dimension_numbers = #tpu.dot_dimension_numbers<[1], [0], [0], [1], [0, 0, 1, 1], [], []>} : vector<2x128xf32>, vector<128x512xf32>, vector<2x512xf32> -> vector<2x512xf32>
    %51 = arith.addf %49, %50 : vector<2x512xf32>
    %52 = vector.extract_strided_slice %51 {offsets = [0, 0], sizes = [2, 384], strides = [1, 1]} : vector<2x512xf32> to vector<2x384xf32>
    %cst_33 = arith.constant 5.000000e-01 : f32
    %53 = vector.broadcast %cst_33 : f32 to vector<2x384xf32>
    %54 = arith.mulf %53, %52 : vector<2x384xf32>
    %55 = math.tanh %54 : vector<2x384xf32>
    %cst_34 = arith.constant 1.000000e+00 : f32
    %56 = vector.broadcast %cst_34 : f32 to vector<2x384xf32>
    %57 = arith.addf %55, %56 : vector<2x384xf32>
    %cst_35 = arith.constant 5.000000e-01 : f32
    %58 = vector.broadcast %cst_35 : f32 to vector<2x384xf32>
    %59 = arith.mulf %58, %57 : vector<2x384xf32>
    %60 = vector.extract_strided_slice %59 {offsets = [0, 0], sizes = [2, 128], strides = [1, 1]} : vector<2x384xf32> to vector<2x128xf32>
    %61 = vector.extract_strided_slice %59 {offsets = [0, 128], sizes = [2, 128], strides = [1, 1]} : vector<2x384xf32> to vector<2x128xf32>
    %62 = vector.extract_strided_slice %59 {offsets = [0, 256], sizes = [2, 128], strides = [1, 1]} : vector<2x384xf32> to vector<2x128xf32>
    %63 = vector.extract_strided_slice %51 {offsets = [0, 384], sizes = [2, 128], strides = [1, 1]} : vector<2x512xf32> to vector<2x128xf32>
    %64 = math.tanh %63 : vector<2x128xf32>
    %65 = arith.mulf %61, %42 : vector<2x128xf32>
    %66 = arith.mulf %60, %64 : vector<2x128xf32>
    %67 = arith.addf %65, %66 : vector<2x128xf32>
    %68 = math.tanh %67 : vector<2x128xf32>
    %69 = arith.mulf %62, %68 : vector<2x128xf32>
    %c0_36 = arith.constant 0 : index
    %c1_37 = arith.constant 1 : index
    %c0_38 = arith.constant 0 : index
    %70 = vector.load %arg11[%c0_36, %c1_37, %c0_38] : memref<2x8x128xf32, #tpu.memory_space<vmem>>, vector<2x1x128xf32>
    %71 = vector.shape_cast %70 : vector<2x1x128xf32> to vector<2x128xf32>
    %72 = vector.shape_cast %69 : vector<2x128xf32> to vector<2x1x128xf32>
    tpu.vector_store %arg11[%c0_36, %c1_37, %c0_38], %72 {strides = array<i32>} : memref<2x8x128xf32, #tpu.memory_space<vmem>>, vector<2x1x128xf32>,
    %c0_39 = arith.constant 0 : index
    %c2 = arith.constant 2 : index
    %c0_40 = arith.constant 0 : index
    %73 = vector.load %arg10[%c0_39, %c2, %c0_40] : memref<2x8x512xf32, #tpu.memory_space<vmem>>, vector<2x1x512xf32>
    %74 = vector.shape_cast %73 : vector<2x1x512xf32> to vector<2x512xf32>
    %cst_41 = arith.constant dense<0.000000e+00> : vector<2x512xf32>
    %75 = tpu.matmul %69, %20, %cst_41 {dimension_numbers = #tpu.dot_dimension_numbers<[1], [0], [0], [1], [0, 0, 1, 1], [], []>} : vector<2x128xf32>, vector<128x512xf32>, vector<2x512xf32> -> vector<2x512xf32>
    %76 = arith.addf %74, %75 : vector<2x512xf32>
    %77 = vector.extract_strided_slice %76 {offsets = [0, 0], sizes = [2, 384], strides = [1, 1]} : vector<2x512xf32> to vector<2x384xf32>
    %cst_42 = arith.constant 5.000000e-01 : f32
    %78 = vector.broadcast %cst_42 : f32 to vector<2x384xf32>
    %79 = arith.mulf %78, %77 : vector<2x384xf32>
    %80 = math.tanh %79 : vector<2x384xf32>
    %cst_43 = arith.constant 1.000000e+00 : f32
    %81 = vector.broadcast %cst_43 : f32 to vector<2x384xf32>
    %82 = arith.addf %80, %81 : vector<2x384xf32>
    %cst_44 = arith.constant 5.000000e-01 : f32
    %83 = vector.broadcast %cst_44 : f32 to vector<2x384xf32>
    %84 = arith.mulf %83, %82 : vector<2x384xf32>
    %85 = vector.extract_strided_slice %84 {offsets = [0, 0], sizes = [2, 128], strides = [1, 1]} : vector<2x384xf32> to vector<2x128xf32>
    %86 = vector.extract_strided_slice %84 {offsets = [0, 128], sizes = [2, 128], strides = [1, 1]} : vector<2x384xf32> to vector<2x128xf32>
    %87 = vector.extract_strided_slice %84 {offsets = [0, 256], sizes = [2, 128], strides = [1, 1]} : vector<2x384xf32> to vector<2x128xf32>
    %88 = vector.extract_strided_slice %76 {offsets = [0, 384], sizes = [2, 128], strides = [1, 1]} : vector<2x512xf32> to vector<2x128xf32>
    %89 = math.tanh %88 : vector<2x128xf32>
    %90 = arith.mulf %86, %67 : vector<2x128xf32>
    %91 = arith.mulf %85, %89 : vector<2x128xf32>
    %92 = arith.addf %90, %91 : vector<2x128xf32>
    %93 = math.tanh %92 : vector<2x128xf32>
    %94 = arith.mulf %87, %93 : vector<2x128xf32>
    %c0_45 = arith.constant 0 : index
    %c2_46 = arith.constant 2 : index
    %c0_47 = arith.constant 0 : index
    %95 = vector.load %arg11[%c0_45, %c2_46, %c0_47] : memref<2x8x128xf32, #tpu.memory_space<vmem>>, vector<2x1x128xf32>
    %96 = vector.shape_cast %95 : vector<2x1x128xf32> to vector<2x128xf32>
    %97 = vector.shape_cast %94 : vector<2x128xf32> to vector<2x1x128xf32>
    tpu.vector_store %arg11[%c0_45, %c2_46, %c0_47], %97 {strides = array<i32>} : memref<2x8x128xf32, #tpu.memory_space<vmem>>, vector<2x1x128xf32>,
    %c0_48 = arith.constant 0 : index
    %c3 = arith.constant 3 : index
    %c0_49 = arith.constant 0 : index
    %98 = vector.load %arg10[%c0_48, %c3, %c0_49] : memref<2x8x512xf32, #tpu.memory_space<vmem>>, vector<2x1x512xf32>
    %99 = vector.shape_cast %98 : vector<2x1x512xf32> to vector<2x512xf32>
    %cst_50 = arith.constant dense<0.000000e+00> : vector<2x512xf32>
    %100 = tpu.matmul %94, %20, %cst_50 {dimension_numbers = #tpu.dot_dimension_numbers<[1], [0], [0], [1], [0, 0, 1, 1], [], []>} : vector<2x128xf32>, vector<128x512xf32>, vector<2x512xf32> -> vector<2x512xf32>
    %101 = arith.addf %99, %100 : vector<2x512xf32>
    %102 = vector.extract_strided_slice %101 {offsets = [0, 0], sizes = [2, 384], strides = [1, 1]} : vector<2x512xf32> to vector<2x384xf32>
    %cst_51 = arith.constant 5.000000e-01 : f32
    %103 = vector.broadcast %cst_51 : f32 to vector<2x384xf32>
    %104 = arith.mulf %103, %102 : vector<2x384xf32>
    %105 = math.tanh %104 : vector<2x384xf32>
    %cst_52 = arith.constant 1.000000e+00 : f32
    %106 = vector.broadcast %cst_52 : f32 to vector<2x384xf32>
    %107 = arith.addf %105, %106 : vector<2x384xf32>
    %cst_53 = arith.constant 5.000000e-01 : f32
    %108 = vector.broadcast %cst_53 : f32 to vector<2x384xf32>
    %109 = arith.mulf %108, %107 : vector<2x384xf32>
    %110 = vector.extract_strided_slice %109 {offsets = [0, 0], sizes = [2, 128], strides = [1, 1]} : vector<2x384xf32> to vector<2x128xf32>
    %111 = vector.extract_strided_slice %109 {offsets = [0, 128], sizes = [2, 128], strides = [1, 1]} : vector<2x384xf32> to vector<2x128xf32>
    %112 = vector.extract_strided_slice %109 {offsets = [0, 256], sizes = [2, 128], strides = [1, 1]} : vector<2x384xf32> to vector<2x128xf32>
    %113 = vector.extract_strided_slice %101 {offsets = [0, 384], sizes = [2, 128], strides = [1, 1]} : vector<2x512xf32> to vector<2x128xf32>
    %114 = math.tanh %113 : vector<2x128xf32>
    %115 = arith.mulf %111, %92 : vector<2x128xf32>
    %116 = arith.mulf %110, %114 : vector<2x128xf32>
    %117 = arith.addf %115, %116 : vector<2x128xf32>
    %118 = math.tanh %117 : vector<2x128xf32>
    %119 = arith.mulf %112, %118 : vector<2x128xf32>
    %c0_54 = arith.constant 0 : index
    %c3_55 = arith.constant 3 : index
    %c0_56 = arith.constant 0 : index
    %120 = vector.load %arg11[%c0_54, %c3_55, %c0_56] : memref<2x8x128xf32, #tpu.memory_space<vmem>>, vector<2x1x128xf32>
    %121 = vector.shape_cast %120 : vector<2x1x128xf32> to vector<2x128xf32>
    %122 = vector.shape_cast %119 : vector<2x128xf32> to vector<2x1x128xf32>
    tpu.vector_store %arg11[%c0_54, %c3_55, %c0_56], %122 {strides = array<i32>} : memref<2x8x128xf32, #tpu.memory_space<vmem>>, vector<2x1x128xf32>,
    %c0_57 = arith.constant 0 : index
    %c4 = arith.constant 4 : index
    %c0_58 = arith.constant 0 : index
    %123 = vector.load %arg10[%c0_57, %c4, %c0_58] : memref<2x8x512xf32, #tpu.memory_space<vmem>>, vector<2x1x512xf32>
    %124 = vector.shape_cast %123 : vector<2x1x512xf32> to vector<2x512xf32>
    %cst_59 = arith.constant dense<0.000000e+00> : vector<2x512xf32>
    %125 = tpu.matmul %119, %20, %cst_59 {dimension_numbers = #tpu.dot_dimension_numbers<[1], [0], [0], [1], [0, 0, 1, 1], [], []>} : vector<2x128xf32>, vector<128x512xf32>, vector<2x512xf32> -> vector<2x512xf32>
    %126 = arith.addf %124, %125 : vector<2x512xf32>
    %127 = vector.extract_strided_slice %126 {offsets = [0, 0], sizes = [2, 384], strides = [1, 1]} : vector<2x512xf32> to vector<2x384xf32>
    %cst_60 = arith.constant 5.000000e-01 : f32
    %128 = vector.broadcast %cst_60 : f32 to vector<2x384xf32>
    %129 = arith.mulf %128, %127 : vector<2x384xf32>
    %130 = math.tanh %129 : vector<2x384xf32>
    %cst_61 = arith.constant 1.000000e+00 : f32
    %131 = vector.broadcast %cst_61 : f32 to vector<2x384xf32>
    %132 = arith.addf %130, %131 : vector<2x384xf32>
    %cst_62 = arith.constant 5.000000e-01 : f32
    %133 = vector.broadcast %cst_62 : f32 to vector<2x384xf32>
    %134 = arith.mulf %133, %132 : vector<2x384xf32>
    %135 = vector.extract_strided_slice %134 {offsets = [0, 0], sizes = [2, 128], strides = [1, 1]} : vector<2x384xf32> to vector<2x128xf32>
    %136 = vector.extract_strided_slice %134 {offsets = [0, 128], sizes = [2, 128], strides = [1, 1]} : vector<2x384xf32> to vector<2x128xf32>
    %137 = vector.extract_strided_slice %134 {offsets = [0, 256], sizes = [2, 128], strides = [1, 1]} : vector<2x384xf32> to vector<2x128xf32>
    %138 = vector.extract_strided_slice %126 {offsets = [0, 384], sizes = [2, 128], strides = [1, 1]} : vector<2x512xf32> to vector<2x128xf32>
    %139 = math.tanh %138 : vector<2x128xf32>
    %140 = arith.mulf %136, %117 : vector<2x128xf32>
    %141 = arith.mulf %135, %139 : vector<2x128xf32>
    %142 = arith.addf %140, %141 : vector<2x128xf32>
    %143 = math.tanh %142 : vector<2x128xf32>
    %144 = arith.mulf %137, %143 : vector<2x128xf32>
    %c0_63 = arith.constant 0 : index
    %c4_64 = arith.constant 4 : index
    %c0_65 = arith.constant 0 : index
    %145 = vector.load %arg11[%c0_63, %c4_64, %c0_65] : memref<2x8x128xf32, #tpu.memory_space<vmem>>, vector<2x1x128xf32>
    %146 = vector.shape_cast %145 : vector<2x1x128xf32> to vector<2x128xf32>
    %147 = vector.shape_cast %144 : vector<2x128xf32> to vector<2x1x128xf32>
    tpu.vector_store %arg11[%c0_63, %c4_64, %c0_65], %147 {strides = array<i32>} : memref<2x8x128xf32, #tpu.memory_space<vmem>>, vector<2x1x128xf32>,
    %c0_66 = arith.constant 0 : index
    %c5 = arith.constant 5 : index
    %c0_67 = arith.constant 0 : index
    %148 = vector.load %arg10[%c0_66, %c5, %c0_67] : memref<2x8x512xf32, #tpu.memory_space<vmem>>, vector<2x1x512xf32>
    %149 = vector.shape_cast %148 : vector<2x1x512xf32> to vector<2x512xf32>
    %cst_68 = arith.constant dense<0.000000e+00> : vector<2x512xf32>
    %150 = tpu.matmul %144, %20, %cst_68 {dimension_numbers = #tpu.dot_dimension_numbers<[1], [0], [0], [1], [0, 0, 1, 1], [], []>} : vector<2x128xf32>, vector<128x512xf32>, vector<2x512xf32> -> vector<2x512xf32>
    %151 = arith.addf %149, %150 : vector<2x512xf32>
    %152 = vector.extract_strided_slice %151 {offsets = [0, 0], sizes = [2, 384], strides = [1, 1]} : vector<2x512xf32> to vector<2x384xf32>
    %cst_69 = arith.constant 5.000000e-01 : f32
    %153 = vector.broadcast %cst_69 : f32 to vector<2x384xf32>
    %154 = arith.mulf %153, %152 : vector<2x384xf32>
    %155 = math.tanh %154 : vector<2x384xf32>
    %cst_70 = arith.constant 1.000000e+00 : f32
    %156 = vector.broadcast %cst_70 : f32 to vector<2x384xf32>
    %157 = arith.addf %155, %156 : vector<2x384xf32>
    %cst_71 = arith.constant 5.000000e-01 : f32
    %158 = vector.broadcast %cst_71 : f32 to vector<2x384xf32>
    %159 = arith.mulf %158, %157 : vector<2x384xf32>
    %160 = vector.extract_strided_slice %159 {offsets = [0, 0], sizes = [2, 128], strides = [1, 1]} : vector<2x384xf32> to vector<2x128xf32>
    %161 = vector.extract_strided_slice %159 {offsets = [0, 128], sizes = [2, 128], strides = [1, 1]} : vector<2x384xf32> to vector<2x128xf32>
    %162 = vector.extract_strided_slice %159 {offsets = [0, 256], sizes = [2, 128], strides = [1, 1]} : vector<2x384xf32> to vector<2x128xf32>
    %163 = vector.extract_strided_slice %151 {offsets = [0, 384], sizes = [2, 128], strides = [1, 1]} : vector<2x512xf32> to vector<2x128xf32>
    %164 = math.tanh %163 : vector<2x128xf32>
    %165 = arith.mulf %161, %142 : vector<2x128xf32>
    %166 = arith.mulf %160, %164 : vector<2x128xf32>
    %167 = arith.addf %165, %166 : vector<2x128xf32>
    %168 = math.tanh %167 : vector<2x128xf32>
    %169 = arith.mulf %162, %168 : vector<2x128xf32>
    %c0_72 = arith.constant 0 : index
    %c5_73 = arith.constant 5 : index
    %c0_74 = arith.constant 0 : index
    %170 = vector.load %arg11[%c0_72, %c5_73, %c0_74] : memref<2x8x128xf32, #tpu.memory_space<vmem>>, vector<2x1x128xf32>
    %171 = vector.shape_cast %170 : vector<2x1x128xf32> to vector<2x128xf32>
    %172 = vector.shape_cast %169 : vector<2x128xf32> to vector<2x1x128xf32>
    tpu.vector_store %arg11[%c0_72, %c5_73, %c0_74], %172 {strides = array<i32>} : memref<2x8x128xf32, #tpu.memory_space<vmem>>, vector<2x1x128xf32>,
    %c0_75 = arith.constant 0 : index
    %c6 = arith.constant 6 : index
    %c0_76 = arith.constant 0 : index
    %173 = vector.load %arg10[%c0_75, %c6, %c0_76] : memref<2x8x512xf32, #tpu.memory_space<vmem>>, vector<2x1x512xf32>
    %174 = vector.shape_cast %173 : vector<2x1x512xf32> to vector<2x512xf32>
    %cst_77 = arith.constant dense<0.000000e+00> : vector<2x512xf32>
    %175 = tpu.matmul %169, %20, %cst_77 {dimension_numbers = #tpu.dot_dimension_numbers<[1], [0], [0], [1], [0, 0, 1, 1], [], []>} : vector<2x128xf32>, vector<128x512xf32>, vector<2x512xf32> -> vector<2x512xf32>
    %176 = arith.addf %174, %175 : vector<2x512xf32>
    %177 = vector.extract_strided_slice %176 {offsets = [0, 0], sizes = [2, 384], strides = [1, 1]} : vector<2x512xf32> to vector<2x384xf32>
    %cst_78 = arith.constant 5.000000e-01 : f32
    %178 = vector.broadcast %cst_78 : f32 to vector<2x384xf32>
    %179 = arith.mulf %178, %177 : vector<2x384xf32>
    %180 = math.tanh %179 : vector<2x384xf32>
    %cst_79 = arith.constant 1.000000e+00 : f32
    %181 = vector.broadcast %cst_79 : f32 to vector<2x384xf32>
    %182 = arith.addf %180, %181 : vector<2x384xf32>
    %cst_80 = arith.constant 5.000000e-01 : f32
    %183 = vector.broadcast %cst_80 : f32 to vector<2x384xf32>
    %184 = arith.mulf %183, %182 : vector<2x384xf32>
    %185 = vector.extract_strided_slice %184 {offsets = [0, 0], sizes = [2, 128], strides = [1, 1]} : vector<2x384xf32> to vector<2x128xf32>
    %186 = vector.extract_strided_slice %184 {offsets = [0, 128], sizes = [2, 128], strides = [1, 1]} : vector<2x384xf32> to vector<2x128xf32>
    %187 = vector.extract_strided_slice %184 {offsets = [0, 256], sizes = [2, 128], strides = [1, 1]} : vector<2x384xf32> to vector<2x128xf32>
    %188 = vector.extract_strided_slice %176 {offsets = [0, 384], sizes = [2, 128], strides = [1, 1]} : vector<2x512xf32> to vector<2x128xf32>
    %189 = math.tanh %188 : vector<2x128xf32>
    %190 = arith.mulf %186, %167 : vector<2x128xf32>
    %191 = arith.mulf %185, %189 : vector<2x128xf32>
    %192 = arith.addf %190, %191 : vector<2x128xf32>
    %193 = math.tanh %192 : vector<2x128xf32>
    %194 = arith.mulf %187, %193 : vector<2x128xf32>
    %c0_81 = arith.constant 0 : index
    %c6_82 = arith.constant 6 : index
    %c0_83 = arith.constant 0 : index
    %195 = vector.load %arg11[%c0_81, %c6_82, %c0_83] : memref<2x8x128xf32, #tpu.memory_space<vmem>>, vector<2x1x128xf32>
    %196 = vector.shape_cast %195 : vector<2x1x128xf32> to vector<2x128xf32>
    %197 = vector.shape_cast %194 : vector<2x128xf32> to vector<2x1x128xf32>
    tpu.vector_store %arg11[%c0_81, %c6_82, %c0_83], %197 {strides = array<i32>} : memref<2x8x128xf32, #tpu.memory_space<vmem>>, vector<2x1x128xf32>,
    %c0_84 = arith.constant 0 : index
    %c7 = arith.constant 7 : index
    %c0_85 = arith.constant 0 : index
    %198 = vector.load %arg10[%c0_84, %c7, %c0_85] : memref<2x8x512xf32, #tpu.memory_space<vmem>>, vector<2x1x512xf32>
    %199 = vector.shape_cast %198 : vector<2x1x512xf32> to vector<2x512xf32>
    %cst_86 = arith.constant dense<0.000000e+00> : vector<2x512xf32>
    %200 = tpu.matmul %194, %20, %cst_86 {dimension_numbers = #tpu.dot_dimension_numbers<[1], [0], [0], [1], [0, 0, 1, 1], [], []>} : vector<2x128xf32>, vector<128x512xf32>, vector<2x512xf32> -> vector<2x512xf32>
    %201 = arith.addf %199, %200 : vector<2x512xf32>
    %202 = vector.extract_strided_slice %201 {offsets = [0, 0], sizes = [2, 384], strides = [1, 1]} : vector<2x512xf32> to vector<2x384xf32>
    %cst_87 = arith.constant 5.000000e-01 : f32
    %203 = vector.broadcast %cst_87 : f32 to vector<2x384xf32>
    %204 = arith.mulf %203, %202 : vector<2x384xf32>
    %205 = math.tanh %204 : vector<2x384xf32>
    %cst_88 = arith.constant 1.000000e+00 : f32
    %206 = vector.broadcast %cst_88 : f32 to vector<2x384xf32>
    %207 = arith.addf %205, %206 : vector<2x384xf32>
    %cst_89 = arith.constant 5.000000e-01 : f32
    %208 = vector.broadcast %cst_89 : f32 to vector<2x384xf32>
    %209 = arith.mulf %208, %207 : vector<2x384xf32>
    %210 = vector.extract_strided_slice %209 {offsets = [0, 0], sizes = [2, 128], strides = [1, 1]} : vector<2x384xf32> to vector<2x128xf32>
    %211 = vector.extract_strided_slice %209 {offsets = [0, 128], sizes = [2, 128], strides = [1, 1]} : vector<2x384xf32> to vector<2x128xf32>
    %212 = vector.extract_strided_slice %209 {offsets = [0, 256], sizes = [2, 128], strides = [1, 1]} : vector<2x384xf32> to vector<2x128xf32>
    %213 = vector.extract_strided_slice %201 {offsets = [0, 384], sizes = [2, 128], strides = [1, 1]} : vector<2x512xf32> to vector<2x128xf32>
    %214 = math.tanh %213 : vector<2x128xf32>
    %215 = arith.mulf %211, %192 : vector<2x128xf32>
    %216 = arith.mulf %210, %214 : vector<2x128xf32>
    %217 = arith.addf %215, %216 : vector<2x128xf32>
    %218 = math.tanh %217 : vector<2x128xf32>
    %219 = arith.mulf %212, %218 : vector<2x128xf32>
    %c0_90 = arith.constant 0 : index
    %c7_91 = arith.constant 7 : index
    %c0_92 = arith.constant 0 : index
    %220 = vector.load %arg11[%c0_90, %c7_91, %c0_92] : memref<2x8x128xf32, #tpu.memory_space<vmem>>, vector<2x1x128xf32>
    %221 = vector.shape_cast %220 : vector<2x1x128xf32> to vector<2x128xf32>
    %222 = vector.shape_cast %219 : vector<2x128xf32> to vector<2x1x128xf32>
    tpu.vector_store %arg11[%c0_90, %c7_91, %c0_92], %222 {strides = array<i32>} : memref<2x8x128xf32, #tpu.memory_space<vmem>>, vector<2x1x128xf32>,
    %c0_93 = arith.constant 0 : index
    %c0_94 = arith.constant 0 : index
    %c0_95 = arith.constant 0 : index
    %223 = vector.load %arg11[%c0_93, %c0_94, %c0_95] : memref<2x8x128xf32, #tpu.memory_space<vmem>>, vector<1x8x128xf32>
    %224 = vector.shape_cast %223 : vector<1x8x128xf32> to vector<8x128xf32>
    %225 = math.tanh %224 : vector<8x128xf32>
    %c0_96 = arith.constant 0 : index
    %c0_97 = arith.constant 0 : index
    %226 = vector.load %arg7[%c0_96, %c0_97] : memref<128x128xf32, #tpu.memory_space<vmem>>, vector<128x128xf32>
    %cst_98 = arith.constant dense<0.000000e+00> : vector<8x128xf32>
    %227 = tpu.matmul %225, %226, %cst_98 {dimension_numbers = #tpu.dot_dimension_numbers<[1], [0], [0], [1], [0, 0, 1, 1], [], []>} : vector<8x128xf32>, vector<128x128xf32>, vector<8x128xf32> -> vector<8x128xf32>
    %c0_99 = arith.constant 0 : index
    %c0_100 = arith.constant 0 : index
    %228 = vector.load %arg8[%c0_99, %c0_100] : memref<1x128xf32, #tpu.memory_space<vmem>>, vector<1x128xf32>
    %229 = vector.broadcast %228 : vector<1x128xf32> to vector<8x128xf32>
    %230 = arith.addf %227, %229 : vector<8x128xf32>
    %c0_101 = arith.constant 0 : index
    %c0_102 = arith.constant 0 : index
    %231 = vector.load %arg9[%c0_101, %c0_102] : memref<16x128xf32, #tpu.memory_space<vmem>>, vector<8x128xf32>
    tpu.vector_store %arg9[%c0_101, %c0_102], %230 {strides = array<i32>} : memref<16x128xf32, #tpu.memory_space<vmem>>, vector<8x128xf32>,
    %c1_103 = arith.constant 1 : index
    %c0_104 = arith.constant 0 : index
    %c0_105 = arith.constant 0 : index
    %232 = vector.load %arg11[%c1_103, %c0_104, %c0_105] : memref<2x8x128xf32, #tpu.memory_space<vmem>>, vector<1x8x128xf32>
    %233 = vector.shape_cast %232 : vector<1x8x128xf32> to vector<8x128xf32>
    %234 = math.tanh %233 : vector<8x128xf32>
    %c0_106 = arith.constant 0 : index
    %c0_107 = arith.constant 0 : index
    %235 = vector.load %arg7[%c0_106, %c0_107] : memref<128x128xf32, #tpu.memory_space<vmem>>, vector<128x128xf32>
    %cst_108 = arith.constant dense<0.000000e+00> : vector<8x128xf32>
    %236 = tpu.matmul %234, %235, %cst_108 {dimension_numbers = #tpu.dot_dimension_numbers<[1], [0], [0], [1], [0, 0, 1, 1], [], []>} : vector<8x128xf32>, vector<128x128xf32>, vector<8x128xf32> -> vector<8x128xf32>
    %c0_109 = arith.constant 0 : index
    %c0_110 = arith.constant 0 : index
    %237 = vector.load %arg8[%c0_109, %c0_110] : memref<1x128xf32, #tpu.memory_space<vmem>>, vector<1x128xf32>
    %238 = vector.broadcast %237 : vector<1x128xf32> to vector<8x128xf32>
    %239 = arith.addf %236, %238 : vector<8x128xf32>
    %c8 = arith.constant 8 : index
    %c0_111 = arith.constant 0 : index
    %240 = vector.load %arg9[%c8, %c0_111] : memref<16x128xf32, #tpu.memory_space<vmem>>, vector<8x128xf32>
    tpu.vector_store %arg9[%c8, %c0_111], %239 {strides = array<i32>} : memref<16x128xf32, #tpu.memory_space<vmem>>, vector<8x128xf32>,
    return
  }
  func.func @transform_0(%arg0: i32) -> (i32, i32) {
    %c0_i32 = arith.constant 0 : i32
    %c0_i32_0 = arith.constant 0 : i32
    %c0_i32_1 = arith.constant 0 : i32
    return %c0_i32, %c0_i32_0 : i32, i32
  }
  func.func @transform_1(%arg0: i32) -> (i32, i32) {
    %c0_i32 = arith.constant 0 : i32
    %c0_i32_0 = arith.constant 0 : i32
    %c0_i32_1 = arith.constant 0 : i32
    return %c0_i32, %c0_i32_0 : i32, i32
  }
  func.func @transform_2(%arg0: i32) -> (i32, i32) {
    %c0_i32 = arith.constant 0 : i32
    %c0_i32_0 = arith.constant 0 : i32
    %c0_i32_1 = arith.constant 0 : i32
    return %c0_i32, %c0_i32_0 : i32, i32
  }
  func.func @transform_3(%arg0: i32) -> (i32, i32) {
    %c0_i32 = arith.constant 0 : i32
    %c0_i32_0 = arith.constant 0 : i32
    %c0_i32_1 = arith.constant 0 : i32
    return %c0_i32, %c0_i32_0 : i32, i32
  }
  func.func @transform_4(%arg0: i32) -> (i32, i32) {
    %c0_i32 = arith.constant 0 : i32
    %c0_i32_0 = arith.constant 0 : i32
    %c0_i32_1 = arith.constant 0 : i32
    return %c0_i32, %c0_i32_0 : i32, i32
  }
  func.func @transform_5(%arg0: i32) -> (i32, i32) {
    %c0_i32 = arith.constant 0 : i32
    %c0_i32_0 = arith.constant 0 : i32
    %c0_i32_1 = arith.constant 0 : i32
    return %c0_i32, %c0_i32_0 : i32, i32
  }
  func.func @transform_6(%arg0: i32) -> (i32, i32) {
    %c0_i32 = arith.constant 0 : i32
    %c0_i32_0 = arith.constant 0 : i32
    %c0_i32_1 = arith.constant 0 : i32
    return %c0_i32, %c0_i32_0 : i32, i32
  }
  func.func @transform_7(%arg0: i32) -> (i32, i32) {
    %c0_i32 = arith.constant 0 : i32
    %c0_i32_0 = arith.constant 0 : i32
    %c0_i32_1 = arith.constant 0 : i32
    return %c0_i32, %c0_i32_0 : i32, i32
  }
  func.func @transform_8(%arg0: i32) -> (i32, i32) {
    %c0_i32 = arith.constant 0 : i32
    %c0_i32_0 = arith.constant 0 : i32
    %c0_i32_1 = arith.constant 0 : i32
    return %c0_i32, %c0_i32_0 : i32, i32
  }
}

</mosaic_0001>

<bundles_post_ra>
// kernel: mlp_lstm_policy_forward.1
= control target key start
LH: loop header
LB: loop body
LE: loop exit
PB: predicated region body
PF: predicated region fallthrough
CT: control target
= control target key end

     0   :  { %13 = vsyncpa [#allocation5], 0  ;;  %s4201_s0 = inlined_call_operand.hbm [shape: f32[16,16], index: 0, kind: input, shape index: {}]   ;;  %s4202_s1 = inlined_call_operand.hbm [shape: f32[16,128], index: 1, kind: input, shape index: {}]   ;;  %s4203_s2 = inlined_call_operand.vmem [shape: f32[1,128], index: 2, kind: input, shape index: {}]   ;;  %s4204_s3 = inlined_call_operand.hbm [shape: f32[128,512], index: 3, kind: input, shape index: {}]   ;;  %s4205_s4 = inlined_call_operand.vmem [shape: f32[1,512], index: 4, kind: input, shape index: {}]   ;;  %s4206_s5 = inlined_call_operand.hbm [shape: f32[128,512], index: 5, kind: input, shape index: {}]   ;;  %s4207_s6 = inlined_call_operand.hbm [shape: f32[128,128], index: 6, kind: input, shape index: {}]   ;;  %s4208_s7 = inlined_call_operand.vmem [shape: f32[1,128], index: 7, kind: input, shape index: {}]   ;;  %s4209_s8 = inlined_call_operand.vmem [shape: f32[16,128], index: 8, kind: output, shape index: {}]  }
   0x1   :  { %14 = vsyncpa [#allocation7], 0 }
   0x2   :  { %15 = vsyncpa [#allocation10], 0  ;;  %s3603_s27 = smov [#allocation6]   ;;  %s3487_s9 = scalar_lea.hbm %s4202_s1, 256 }
   0x3   :  { %s33_s28 = sshll.u32 %s3603_s27, 4  ;;  %p3488_p0 = scmp.ne.s32.totalorder %s4202_s1, %s3487_s9  ;;  %s34_s28 = int_to_ptr.vmem [resolvable:$true] %s33_s28 }
   0x4   :  { %p3491_p1 = scmp.lt.u32.totalorder %s3487_s9, %s4202_s1 }
   0x6   :  { %p3493_p2 = pnand %p3491_p1, %p3488_p0 }
   0x8   :  { %3496 = shalt.err (!%p3493_p2)
}
   0x9   :  { %s3497_s14 = scalar_lea.vmem %s34_s28, 256  ;;  %p3502_p4 = scmp.lt.s32.totalorder %s34_s28, %s34_s28 }
   0xa   :  { %p3498_p3 = scmp.ne.s32.totalorder %s34_s28, %s3497_s14  ;;  %p3503_p5 = scmp.lt.s32.totalorder %s3497_s14, %s3497_s14 }
   0xc   :  { %p3504_p6 = por %p3503_p5, %p3502_p4 }
   0xe   :  { %p3505_p7 = pnand %p3504_p6, %p3498_p3 }
  0x10   :  { %3508 = shalt.err (!%p3505_p7)
}
  0x11   :  { %s3604_s15 = smov 128   ;;  %s3605_s16 = smov 8  }
  0x12   :  { %39 = dma.hbm_to_vmem [thread:$0]  %s4202_s1, 256, %s34_s28, [#allocation7], %s3604_s15, %s3604_s15, %s3605_s16  }
  0x13   :  { %s3606_s19 = smov [#allocation9]   ;;  %s3607_s21 = smov [#allocation4]  }
  0x14   :  { %s61_s20 = sshll.u32 %s3606_s19, 4  ;;  %s21_s22 = sshll.u32 %s3607_s21, 4  ;;  %s62_s20 = int_to_ptr.vmem [resolvable:$true] %s61_s20  ;;  %s22_s22 = int_to_ptr.vmem [resolvable:$true] %s21_s22 }
  0x15   :  { %s3509_s25 = scalar_lea.hbm %s4206_s5, 8192 }
  0x16   :  { %p3510_p8 = scmp.ne.s32.totalorder %s4206_s5, %s3509_s25  ;;  %p3513_p9 = scmp.lt.u32.totalorder %s3509_s25, %s4206_s5 }
  0x18   :  { %p3515_p10 = pnand %p3513_p9, %p3510_p8 }
  0x1a   :  { %3518 = shalt.err (!%p3515_p10)
}
  0x1b   :  { %s3519_s1 = scalar_lea.vmem %s62_s20, 8192  ;;  %p3524_p12 = scmp.lt.s32.totalorder %s62_s20, %s62_s20 }
  0x1c   :  { %p3520_p11 = scmp.ne.s32.totalorder %s62_s20, %s3519_s1  ;;  %p3525_p13 = scmp.lt.s32.totalorder %s3519_s1, %s3519_s1 }
  0x1e   :  { %p3526_p0 = por %p3525_p13, %p3524_p12 }
  0x20   :  { %p3527_p1 = pnand %p3526_p0, %p3520_p11 }
  0x22   :  { %3530 = shalt.err (!%p3527_p1)
}
  0x23   :  { %s3608_s28 = smov 512   ;;  %s3609_s9 = smov 32  }
  0x24   :  { %67 = dma.hbm_to_vmem [thread:$0]  %s4206_s5, 8192, %s62_s20, [#allocation10], %s3608_s28, %s3608_s28, %s3609_s9  }
  0x25   :  { %s3531_s14 = scalar_lea.hbm %s4201_s0, 256 }
  0x26   :  { %p3532_p2 = scmp.ne.s32.totalorder %s4201_s0, %s3531_s14  ;;  %p3535_p3 = scmp.lt.u32.totalorder %s3531_s14, %s4201_s0 }
  0x28   :  { %p3537_p4 = pnand %p3535_p3, %p3532_p2 }
  0x2a   :  { %3540 = shalt.err (!%p3537_p4)
}
  0x2b   :  { %s3541_s23 = scalar_lea.vmem %s22_s22, 256  ;;  %p3546_p6 = scmp.lt.s32.totalorder %s22_s22, %s22_s22 }
  0x2c   :  { %p3542_p5 = scmp.ne.s32.totalorder %s22_s22, %s3541_s23  ;;  %p3547_p7 = scmp.lt.s32.totalorder %s3541_s23, %s3541_s23 }
  0x2e   :  { %p3548_p8 = por %p3547_p7, %p3546_p6 }
  0x30   :  { %p3549_p9 = pnand %p3548_p8, %p3542_p5 }
  0x32   :  { %3552 = shalt.err (!%p3549_p9)
}
  0x33   :  { %27 = dma.hbm_to_vmem [thread:$0]  %s4201_s0, 256, %s22_s22, [#allocation5], %s3604_s15, %s3604_s15, %s3605_s16  }
  0x34   :  { %s3610_s24 = smov [#allocation8]   ;;  %s3611_s26 = smov [#allocation11]  }
  0x35   :  { %s47_s25 = sshll.u32 %s3610_s24, 4  ;;  %s73_s27 = sshll.u32 %s3611_s26, 4  ;;  %s48_s25 = int_to_ptr.vmem [resolvable:$true] %s47_s25  ;;  %s74_s27 = int_to_ptr.vmem [resolvable:$true] %s73_s27 }
  0x36   :  { %s3553_s1 = scalar_lea.hbm %s4204_s3, 8192 }
  0x37   :  { %p3554_p10 = scmp.ne.s32.totalorder %s4204_s3, %s3553_s1  ;;  %p3557_p11 = scmp.lt.u32.totalorder %s3553_s1, %s4204_s3 }
  0x39   :  { %p3559_p12 = pnand %p3557_p11, %p3554_p10 }
  0x3b   :  { %3562 = shalt.err (!%p3559_p12)
}
  0x3c   :  { %s3563_s0 = scalar_lea.vmem %s48_s25, 8192  ;;  %p3568_p0 = scmp.lt.s32.totalorder %s48_s25, %s48_s25 }
  0x3d   :  { %p3564_p13 = scmp.ne.s32.totalorder %s48_s25, %s3563_s0  ;;  %p3569_p1 = scmp.lt.s32.totalorder %s3563_s0, %s3563_s0 }
  0x3f   :  { %p3570_p2 = por %p3569_p1, %p3568_p0 }
  0x41   :  { %p3571_p3 = pnand %p3570_p2, %p3564_p13 }
  0x43   :  { %3574 = shalt.err (!%p3571_p3)
}
  0x44   :  { %53 = dma.hbm_to_vmem [thread:$0]  %s4204_s3, 8192, %s48_s25, [#allocation7], %s3608_s28, %s3608_s28, %s3609_s9  }
  0x45   :  { %s3575_s19 = scalar_lea.hbm %s4207_s6, 2048 }
  0x46   :  { %p3576_p4 = scmp.ne.s32.totalorder %s4207_s6, %s3575_s19  ;;  %p3579_p5 = scmp.lt.u32.totalorder %s3575_s19, %s4207_s6 }
  0x48   :  { %p3581_p6 = pnand %p3579_p5, %p3576_p4 }
  0x4a   :  { %3584 = shalt.err (!%p3581_p6)
}
  0x4b   :  { %s3585_s24 = scalar_lea.vmem %s74_s27, 2048  ;;  %p3590_p8 = scmp.lt.s32.totalorder %s74_s27, %s74_s27 }
  0x4c   :  { %p3586_p7 = scmp.ne.s32.totalorder %s74_s27, %s3585_s24  ;;  %p3591_p9 = scmp.lt.s32.totalorder %s3585_s24, %s3585_s24 }
  0x4e   :  { %p3592_p10 = por %p3591_p9, %p3590_p8 }
  0x50   :  { %p3593_p11 = pnand %p3592_p10, %p3586_p7 }
  0x52   :  { %3596 = shalt.err (!%p3593_p11)
}
  0x53   :  { %79 = dma.hbm_to_vmem [thread:$0]  %s4207_s6, 2048, %s74_s27, [#allocation10], %s3604_s15, %s3604_s15, %s3605_s16  }
  0x54   :  { %3597 = dma.done.wait [#allocation5], 256  }
  0x55   :  { %3598 = vsyncadd [#allocation5], 4294967040 }
  0x56   :  { %3599 = dma.done.wait [#allocation7], 8448  }
  0x57   :  { %3600 = vsyncadd [#allocation7], 4294958848 }
  0x58   :  { %3601 = dma.done.wait [#allocation10], 10240  }
  0x59   :  { %3602 = vsyncadd [#allocation10], 4294957056  ;;  %vm108_vm0 = vcmask 130048   ;;  %v99_v0 = vld [vmem:[#allocation6] sm:$0xff]  ;;  %v100_v1 = vld [vmem:[#allocation6 + $0x8] sm:$0xff]  ;;  %vm3615_vm1 = vmmov 0  }
  0x5a   :  { %v97_v2 = vld [vmem:[#allocation4] sm:$0xff]  ;;  %v2742_v3 = vpack.c.bf16 %v100_v1, %v99_v0  ;;  %v193_v4 = vld [vmem:[#allocation8 + $0x8] sm:$0xff]  ;;  %v195_v8 = vld [vmem:[#allocation8 + $0x18] sm:$0xff] }
  0x5b   :  { %2669 = vmatprep.mubr.msk.f32.mxu0 %vm108_vm0, %v97_v2  ;;  %v197_v5 = vld [vmem:[#allocation8 + $0x28] sm:$0xff]  ;;  %v199_v9 = vld [vmem:[#allocation8 + $0x38] sm:$0xff]  ;;  %v192_v10 = vld [vmem:[#allocation8] sm:$0xff] }
  0x5c   :  { %v98_v6 = vld [vmem:[#allocation4 + $0x8] sm:$0xff]  ;;  %v2746_v7 = vpack.c.bf16 %v197_v5, %v193_v4  ;;  %2743 = vmatprep.subr.bf16.mxu0 %v2742_v3  ;;  %v2778_v11 = vpack.c.bf16 %v199_v9, %v195_v8  ;;  %v196_v12 = vld [vmem:[#allocation8 + $0x20] sm:$0xff]  ;;  %v194_v13 = vld [vmem:[#allocation8 + $0x10] sm:$0xff] }
  0x5d   :  { %v198_v14 = vld [vmem:[#allocation8 + $0x30] sm:$0xff]  ;;  %2745 = vmatpush3.bf16.msra.mxu0 %v2742_v3  ;;  %v2748_v15 = vpack.c.bf16 %v196_v12, %v192_v10  ;;  %v201_v17 = vld [vmem:[#allocation8 + $0x48] sm:$0xff]  ;;  %v203_v19 = vld [vmem:[#allocation8 + $0x58] sm:$0xff] }
  0x5e   :  { %2747 = vmatprep.subr.bf16.mxu1 %v2746_v7  ;;  %v2780_v16 = vpack.c.bf16 %v198_v14, %v194_v13  ;;  %v205_v18 = vld [vmem:[#allocation8 + $0x68] sm:$0xff]  ;;  %2779 = vmatprep.subr.bf16.mxu0 %v2778_v11  ;;  %v207_v21 = vld [vmem:[#allocation8 + $0x78] sm:$0xff]  ;;  %v200_v22 = vld [vmem:[#allocation8 + $0x40] sm:$0xff] }
  0x5f   :  { %v2750_v20 = vpack.c.bf16 %v205_v18, %v201_v17  ;;  %v204_v23 = vld [vmem:[#allocation8 + $0x60] sm:$0xff]  ;;  %2749 = vmatpush1.bf16.msra.mxu1 %v2748_v15  ;;  %v2782_v24 = vpack.c.bf16 %v207_v21, %v203_v19  ;;  %v202_v26 = vld [vmem:[#allocation8 + $0x50] sm:$0xff]  ;;  %v209_v28 = vld [vmem:[#allocation8 + $0x88] sm:$0xff] }
  0x60   :  { %v2752_v25 = vpack.c.bf16 %v204_v23, %v200_v22  ;;  %v206_v27 = vld [vmem:[#allocation8 + $0x70] sm:$0xff]  ;;  %2670 = vmatmul.mubr.msk.f32.vlgmr.msra.gmra.mrb[0].mxu0 %vm108_vm0, %v98_v6  ;;  %v213_v29 = vld [vmem:[#allocation8 + $0xa8] sm:$0xff]  ;;  %v211_v30 = vld [vmem:[#allocation8 + $0x98] sm:$0xff] }
  0x61   :  { %2751 = vmatprep.subr.bf16.mxu1 %v2750_v20  ;;  %v215_v31 = vld [vmem:[#allocation8 + $0xb8] sm:$0xff]  ;;  %2781 = vmatpush1.bf16.msra.mxu0 %v2780_v16  ;;  %v2784_v32 = vpack.c.bf16 %v206_v27, %v202_v26  ;;  %v2754_v33 = vpack.c.bf16 %v213_v29, %v209_v28  ;;  %v208_v34 = vld [vmem:[#allocation8 + $0x80] sm:$0xff]  ;;  %v210_v36 = vld [vmem:[#allocation8 + $0x90] sm:$0xff] }
  0x62   :  { %v212_v35 = vld [vmem:[#allocation8 + $0xa0] sm:$0xff]  ;;  %2783 = vmatprep.subr.bf16.mxu0 %v2782_v24  ;;  %v2786_v37 = vpack.c.bf16 %v215_v31, %v211_v30  ;;  %v214_v38 = vld [vmem:[#allocation8 + $0xb0] sm:$0xff]  ;;  %v217_v39 = vld [vmem:[#allocation8 + $0xc8] sm:$0xff] }
  0x63   :  { %v221_v40 = vld [vmem:[#allocation8 + $0xe8] sm:$0xff]  ;;  %2753 = vmatpush1.bf16.msra.mxu1 %v2752_v25  ;;  %v2756_v41 = vpack.c.bf16 %v212_v35, %v208_v34  ;;  %v219_v42 = vld [vmem:[#allocation8 + $0xd8] sm:$0xff]  ;;  %v216_v45 = vld [vmem:[#allocation8 + $0xc0] sm:$0xff]  ;;  %v2788_v47 = vpack.c.bf16 %v214_v38, %v210_v36  ;;  %v3612_v25 = vmov 0.0  }
  0x64   :  { %v223_v43 = vld [vmem:[#allocation8 + $0xf8] sm:$0xff]  ;;  %2755 = vmatprep.subr.bf16.mxu1 %v2754_v33  ;;  %v2758_v44 = vpack.c.bf16 %v221_v40, %v217_v39  ;;  %v220_v46 = vld [vmem:[#allocation8 + $0xe0] sm:$0xff]  ;;  %v225_v48 = vld [vmem:[#allocation8 + $0x108] sm:$0xff]  ;;  %342 = vmatprep.mubr.f32.mxu1 %v3612_v25 }
  0x65   :  { %2785 = vmatpush1.bf16.msra.mxu0 %v2784_v32  ;;  %v229_v49 = vld [vmem:[#allocation8 + $0x128] sm:$0xff]  ;;  %v2790_v50 = vpack.c.bf16 %v223_v43, %v219_v42  ;;  %v218_v51 = vld [vmem:[#allocation8 + $0xd0] sm:$0xff]  ;;  %v2760_v53 = vpack.c.bf16 %v220_v46, %v216_v45  ;;  %v227_v54 = vld [vmem:[#allocation8 + $0x118] sm:$0xff]  ;;  %419 = vmatprep.mubr.f32.mxu0 %v3612_v25 }
  0x66   :  { %2787 = vmatprep.subr.bf16.mxu0 %v2786_v37  ;;  %v222_v52 = vld [vmem:[#allocation8 + $0xf0] sm:$0xff]  ;;  %v231_v55 = vld [vmem:[#allocation8 + $0x138] sm:$0xff]  ;;  %v2762_v56 = vpack.c.bf16 %v229_v49, %v225_v48  ;;  %v224_v57 = vld [vmem:[#allocation8 + $0x100] sm:$0xff] }
  0x67   :  { %2757 = vmatpush1.bf16.msra.mxu1 %v2756_v41  ;;  %v228_v58 = vld [vmem:[#allocation8 + $0x120] sm:$0xff]  ;;  %v2792_v59 = vpack.c.bf16 %v222_v52, %v218_v51  ;;  %v2794_v60 = vpack.c.bf16 %v231_v55, %v227_v54  ;;  %v226_v61 = vld [vmem:[#allocation8 + $0x110] sm:$0xff]  ;;  %v233_v1 = vld [vmem:[#allocation8 + $0x148] sm:$0xff] }
  0x68   :  { %2759 = vmatprep.subr.bf16.mxu1 %v2758_v44  ;;  %v230_v62 = vld [vmem:[#allocation8 + $0x130] sm:$0xff]  ;;  %v2764_v63 = vpack.c.bf16 %v228_v58, %v224_v57  ;;  %v237_v2 = vld [vmem:[#allocation8 + $0x168] sm:$0xff]  ;;  %v235_v3 = vld [vmem:[#allocation8 + $0x158] sm:$0xff] }
  0x69   :  { %2789 = vmatpush1.bf16.msra.mxu0 %v2788_v47  ;;  %v2796_v0 = vpack.c.bf16 %v230_v62, %v226_v61  ;;  %v2766_v4 = vpack.c.bf16 %v237_v2, %v233_v1  ;;  %v239_v5 = vld [vmem:[#allocation8 + $0x178] sm:$0xff]  ;;  %v232_v6 = vld [vmem:[#allocation8 + $0x140] sm:$0xff]  ;;  %v234_v9 = vld [vmem:[#allocation8 + $0x150] sm:$0xff] }
  0x6a   :  { %2791 = vmatprep.subr.bf16.mxu0 %v2790_v50  ;;  %v2798_v7 = vpack.c.bf16 %v239_v5, %v235_v3  ;;  %v236_v8 = vld [vmem:[#allocation8 + $0x160] sm:$0xff]  ;;  %v238_v10 = vld [vmem:[#allocation8 + $0x170] sm:$0xff]  ;;  %v241_v13 = vld [vmem:[#allocation8 + $0x188] sm:$0xff] }
  0x6b   :  { %2761 = vmatpush1.bf16.msra.mxu1 %v2760_v53  ;;  %v2768_v11 = vpack.c.bf16 %v236_v8, %v232_v6  ;;  %v2800_v12 = vpack.c.bf16 %v238_v10, %v234_v9  ;;  %v245_v14 = vld [vmem:[#allocation8 + $0x1a8] sm:$0xff]  ;;  %v243_v15 = vld [vmem:[#allocation8 + $0x198] sm:$0xff]  ;;  %v240_v18 = vld [vmem:[#allocation8 + $0x180] sm:$0xff] }
  0x6c   :  { %2763 = vmatprep.subr.bf16.mxu1 %v2762_v56  ;;  %v2770_v16 = vpack.c.bf16 %v245_v14, %v241_v13  ;;  %v247_v17 = vld [vmem:[#allocation8 + $0x1b8] sm:$0xff]  ;;  %v244_v19 = vld [vmem:[#allocation8 + $0x1a0] sm:$0xff]  ;;  %v242_v22 = vld [vmem:[#allocation8 + $0x190] sm:$0xff] }
  0x6d   :  { %2793 = vmatpush1.bf16.msra.mxu0 %v2792_v59  ;;  %v2802_v20 = vpack.c.bf16 %v247_v17, %v243_v15  ;;  %v2772_v21 = vpack.c.bf16 %v244_v19, %v240_v18  ;;  %v246_v23 = vld [vmem:[#allocation8 + $0x1b0] sm:$0xff]  ;;  %v249_v24 = vld [vmem:[#allocation8 + $0x1c8] sm:$0xff]  ;;  %v251_v28 = vld [vmem:[#allocation8 + $0x1d8] sm:$0xff] }
  0x6e   :  { %2795 = vmatprep.subr.bf16.mxu0 %v2794_v60  ;;  %v2804_v26 = vpack.c.bf16 %v246_v23, %v242_v22  ;;  %v253_v27 = vld [vmem:[#allocation8 + $0x1e8] sm:$0xff]  ;;  %v255_v29 = vld [vmem:[#allocation8 + $0x1f8] sm:$0xff]  ;;  %v248_v32 = vld [vmem:[#allocation8 + $0x1c0] sm:$0xff] }
  0x6f   :  { %2765 = vmatpush1.bf16.msra.mxu1 %v2764_v63  ;;  %v2774_v30 = vpack.c.bf16 %v253_v27, %v249_v24  ;;  %v2806_v31 = vpack.c.bf16 %v255_v29, %v251_v28  ;;  %v252_v33 = vld [vmem:[#allocation8 + $0x1e0] sm:$0xff]  ;;  %v250_v34 = vld [vmem:[#allocation8 + $0x1d0] sm:$0xff]  ;;  %v442_v37 = vld [vmem:[#allocation9 + $0x8] sm:$0xff] }
  0x70   :  { %2767 = vmatprep.subr.bf16.mxu1 %v2766_v4  ;;  %v2776_v35 = vpack.c.bf16 %v252_v33, %v248_v32  ;;  %v254_v36 = vld [vmem:[#allocation8 + $0x1f0] sm:$0xff]  ;;  %v446_v38 = vld [vmem:[#allocation9 + $0x28] sm:$0xff]  ;;  %v444_v41 = vld [vmem:[#allocation9 + $0x18] sm:$0xff] }
  0x71   :  { %2797 = vmatpush1.bf16.msra.mxu0 %v2796_v0  ;;  %v2808_v39 = vpack.c.bf16 %v254_v36, %v250_v34  ;;  %v3740_v40 = vpack.c.bf16 %v446_v38, %v442_v37  ;;  %v448_v42 = vld [vmem:[#allocation9 + $0x38] sm:$0xff]  ;;  %v2622_v44 = vld [vmem:[%s4203_s2] ss:$0 sm:$0xff]  ;;  %v443_v51 = vld [vmem:[#allocation9 + $0x10] sm:$0xff] }
  0x72   :  { %2799 = vmatprep.subr.bf16.mxu0 %v2798_v7  ;;  %v3742_v43 = vpack.c.bf16 %v448_v42, %v444_v41  ;;  %v441_v49 = vld [vmem:[#allocation9] sm:$0xff]  ;;  %v447_v52 = vld [vmem:[#allocation9 + $0x30] sm:$0xff]  ;;  %v450_v53 = vld [vmem:[#allocation9 + $0x48] sm:$0xff] }
  0x73   :  { %2769 = vmatpush1.bf16.msra.mxu1 %v2768_v11  ;;  %v445_v50 = vld [vmem:[#allocation9 + $0x20] sm:$0xff]  ;;  %v454_v54 = vld [vmem:[#allocation9 + $0x68] sm:$0xff]  ;;  %v452_v55 = vld [vmem:[#allocation9 + $0x58] sm:$0xff]  ;;  %v3751_v58 = vpack.c.bf16 %v447_v52, %v443_v51 }
  0x74   :  { %2771 = vmatprep.subr.bf16.mxu1 %v2770_v16  ;;  %v456_v56 = vld [vmem:[#allocation9 + $0x78] sm:$0xff]  ;;  %v3749_v57 = vpack.c.bf16 %v445_v50, %v441_v49  ;;  %v449_v59 = vld [vmem:[#allocation9 + $0x40] sm:$0xff]  ;;  %v451_v61 = vld [vmem:[#allocation9 + $0x50] sm:$0xff]  ;;  %v3753_v1 = vpack.c.bf16 %v454_v54, %v450_v53 }
  0x75   :  { %2801 = vmatpush1.bf16.msra.mxu0 %v2800_v12  ;;  %v453_v60 = vld [vmem:[#allocation9 + $0x60] sm:$0xff]  ;;  %v455_v62 = vld [vmem:[#allocation9 + $0x70] sm:$0xff]  ;;  %v458_v63 = vld [vmem:[#allocation9 + $0x88] sm:$0xff]  ;;  %v3755_v2 = vpack.c.bf16 %v456_v56, %v452_v55 }
  0x76   :  { %2803 = vmatprep.subr.bf16.mxu0 %v2802_v20  ;;  %v462_v3 = vld [vmem:[#allocation9 + $0xa8] sm:$0xff]  ;;  %v460_v4 = vld [vmem:[#allocation9 + $0x98] sm:$0xff]  ;;  %v3759_v6 = vpack.c.bf16 %v453_v60, %v449_v59  ;;  %v3761_v7 = vpack.c.bf16 %v455_v62, %v451_v61  ;;  %v457_v8 = vld [vmem:[#allocation9 + $0x80] sm:$0xff] }
  0x77   :  { %2773 = vmatpush1.bf16.msra.mxu1 %v2772_v21  ;;  %v464_v5 = vld [vmem:[#allocation9 + $0xb8] sm:$0xff]  ;;  %v461_v9 = vld [vmem:[#allocation9 + $0xa0] sm:$0xff]  ;;  %v3765_v10 = vpack.c.bf16 %v462_v3, %v458_v63  ;;  %v459_v12 = vld [vmem:[#allocation9 + $0x90] sm:$0xff] }
  0x78   :  { %2775 = vmatprep.subr.bf16.mxu1 %v2774_v30  ;;  %v3767_v11 = vpack.c.bf16 %v464_v5, %v460_v4  ;;  %v463_v13 = vld [vmem:[#allocation9 + $0xb0] sm:$0xff]  ;;  %v466_v14 = vld [vmem:[#allocation9 + $0xc8] sm:$0xff]  ;;  %v468_v17 = vld [vmem:[#allocation9 + $0xd8] sm:$0xff]  ;;  %v3773_v19 = vpack.c.bf16 %v461_v9, %v457_v8 }
  0x79   :  { %2805 = vmatpush1.bf16.msra.mxu0 %v2804_v26  ;;  %v470_v16 = vld [vmem:[#allocation9 + $0xe8] sm:$0xff]  ;;  %v472_v18 = vld [vmem:[#allocation9 + $0xf8] sm:$0xff]  ;;  %v3775_v20 = vpack.c.bf16 %v463_v13, %v459_v12  ;;  %v465_v21 = vld [vmem:[#allocation9 + $0xc0] sm:$0xff] }
  0x7a   :  { %2807 = vmatprep.subr.bf16.mxu0 %v2806_v31  ;;  %v469_v22 = vld [vmem:[#allocation9 + $0xe0] sm:$0xff]  ;;  %v3779_v23 = vpack.c.bf16 %v470_v16, %v466_v14  ;;  %v3781_v24 = vpack.c.bf16 %v472_v18, %v468_v17  ;;  %v467_v26 = vld [vmem:[#allocation9 + $0xd0] sm:$0xff]  ;;  %v474_v28 = vld [vmem:[#allocation9 + $0x108] sm:$0xff] }
  0x7b   :  { %2777 = vmatpush1.bf16.msra.mxu1 %v2776_v35  ;;  %v471_v27 = vld [vmem:[#allocation9 + $0xf0] sm:$0xff]  ;;  %v478_v29 = vld [vmem:[#allocation9 + $0x128] sm:$0xff]  ;;  %v476_v30 = vld [vmem:[#allocation9 + $0x118] sm:$0xff]  ;;  %v3787_v32 = vpack.c.bf16 %v469_v22, %v465_v21 }
  0x7c   :  { %2811 = vmatprep.subr.bf16.mxu1 %v3740_v40  ;;  %v480_v31 = vld [vmem:[#allocation9 + $0x138] sm:$0xff]  ;;  %v3789_v33 = vpack.c.bf16 %v471_v27, %v467_v26  ;;  %v473_v34 = vld [vmem:[#allocation9 + $0x100] sm:$0xff]  ;;  %v3793_v36 = vpack.c.bf16 %v478_v29, %v474_v28  ;;  %v475_v38 = vld [vmem:[#allocation9 + $0x110] sm:$0xff]  ;;  %v258_v29 = vlaneseq }
  0x7d   :  { %2809 = vmatpush1.bf16.msra.mxu0 %v2808_v39  ;;  %v477_v35 = vld [vmem:[#allocation9 + $0x120] sm:$0xff]  ;;  %v3795_v37 = vpack.c.bf16 %v480_v31, %v476_v30  ;;  %v479_v39 = vld [vmem:[#allocation9 + $0x130] sm:$0xff]  ;;  %v482_v41 = vld [vmem:[#allocation9 + $0x148] sm:$0xff] }
  0x7e   :  { %2843 = vmatprep.subr.bf16.mxu0 %v3742_v43  ;;  %v486_v42 = vld [vmem:[#allocation9 + $0x168] sm:$0xff]  ;;  %v485_v49 = vld [vmem:[#allocation9 + $0x160] sm:$0xff]  ;;  %v483_v52 = vld [vmem:[#allocation9 + $0x150] sm:$0xff]  ;;  %v259_v30 = vshrl.u32 %v258_v29, 7 }
  0x7f   :  { %v3805_v50 = vpack.c.bf16 %v486_v42, %v482_v41  ;;  %v487_v53 = vld [vmem:[#allocation9 + $0x170] sm:$0xff]  ;;  %v490_v54 = vld [vmem:[#allocation9 + $0x188] sm:$0xff]  ;;  %v492_v56 = vld [vmem:[#allocation9 + $0x198] sm:$0xff] }
  0x80   :  { %v494_v55 = vld [vmem:[#allocation9 + $0x1a8] sm:$0xff]  ;;  %v496_v59 = vld [vmem:[#allocation9 + $0x1b8] sm:$0xff]  ;;  %v3813_v61 = vpack.c.bf16 %v487_v53, %v483_v52  ;;  %v489_v62 = vld [vmem:[#allocation9 + $0x180] sm:$0xff]  ;;  %v260_v31 = vsub.s32 0, %v259_v30 }
  0x81   :  { %v493_v63 = vld [vmem:[#allocation9 + $0x1a0] sm:$0xff]  ;;  %v3819_v3 = vpack.c.bf16 %v496_v59, %v492_v56  ;;  %v491_v4 = vld [vmem:[#allocation9 + $0x190] sm:$0xff]  ;;  %v498_v8 = vld [vmem:[#allocation9 + $0x1c8] sm:$0xff] }
  0x82   :  { %v495_v5 = vld [vmem:[#allocation9 + $0x1b0] sm:$0xff]  ;;  %v502_v9 = vld [vmem:[#allocation9 + $0x1e8] sm:$0xff]  ;;  %v500_v12 = vld [vmem:[#allocation9 + $0x1d8] sm:$0xff]  ;;  %v3823_v14 = vpack.c.bf16 %v493_v63, %v489_v62 }
  0x83   :  { %v504_v13 = vld [vmem:[#allocation9 + $0x1f8] sm:$0xff]  ;;  %v497_v16 = vld [vmem:[#allocation9 + $0x1c0] sm:$0xff]  ;;  %v3829_v17 = vpack.c.bf16 %v502_v9, %v498_v8  ;;  %v499_v22 = vld [vmem:[#allocation9 + $0x1d0] sm:$0xff] }
  0x84   :  { %v3831_v18 = vpack.c.bf16 %v504_v13, %v500_v12  ;;  %v501_v21 = vld [vmem:[#allocation9 + $0x1e0] sm:$0xff]  ;;  %v503_v26 = vld [vmem:[#allocation9 + $0x1f0] sm:$0xff] }
  0x85   :  { %v3835_v27 = vpack.c.bf16 %v501_v21, %v497_v16  ;;  %v3837_v28 = vpack.c.bf16 %v503_v26, %v499_v22  ;;  %v3613_v16 = vmov 1966171168  }
  0x86   :  { %v657_v21 = vunpack.c.l.s4 %v3613_v16 }
  0x88   :  { %v658_v22 = vunpack.c.0.s8 %v657_v21 }
  0x8a   :  { %v3884_v26 = vsub.s32 %v658_v22, %v259_v30 }
 0x133   :  { %v2671_v45 = vpop.f32.mrb[0].mxu0 }
 0x134   :  { %v181_v46 = vpop.f32.mrb[1].mxu0  ;;  %v187_v48 = vadd.f32 %v2671_v45, %v2622_v44  ;;  %v488_v45 = vld [vmem:[#allocation9 + $0x178] sm:$0xff] }
 0x135   :  { %v182_v47 = vadd.f32 %v2622_v44, %v181_v46  ;;  %v484_v44 = vld [vmem:[#allocation9 + $0x158] sm:$0xff]  ;;  %v3799_v46 = vpack.c.bf16 %v477_v35, %v473_v34  ;;  %v268_v34 = vsub.s32 2, %v259_v30  ;;  %v256_v35 = vld [vmem:[%s4205_s4] sm:$0xf] }
 0x136   :  { %v3807_v51 = vpack.c.bf16 %v488_v45, %v484_v44  ;;  %v261_v41 = vrot.slane %v256_v35, %v260_v31 }
 0x137   :  { %3383 = vtanh.f32 %v182_v47  ;;  %v3801_v47 = vpack.c.bf16 %v479_v39, %v475_v38  ;;  %v264_v38 = vsub.s32 1, %v259_v30  ;;  %v272_v39 = vsub.s32 3, %v259_v30 }
 0x138   :  { %3385 = vtanh.f32 %v187_v48  ;;  %v481_v48 = vld [vmem:[#allocation9 + $0x140] sm:$0xff]  ;;  %v269_v42 = vrot.slane %v256_v35, %v268_v34 }
 0x139   :  { %v3811_v60 = vpack.c.bf16 %v485_v49, %v481_v48  ;;  %v265_v44 = vrot.slane %v256_v35, %v264_v38  ;;  %v273_v45 = vrot.slane %v256_v35, %v272_v39 }
 0x141   :  { %v3384_v0 = vpop.eup %3383 }
 0x142   :  { %343 = vmatmul.mubr.f32.vlgmr.msra.gmra.mrb[0].mxu1 %v3384_v0  ;;  %420 = vmatmul.mubr.f32.vlgmr.msra.gmra.mrb[2].mxu0 %v3384_v0  ;;  %v3386_v15 = vpop.eup %3385  ;;  %v3817_v0 = vpack.c.bf16 %v494_v55, %v490_v54 }
 0x143   :  { %2813 = vmatpush1.bf16.msra.mxu1 %v3749_v57  ;;  %2845 = vmatpush1.bf16.msra.mxu0 %v3751_v58 }
 0x144   :  { %348 = vmatprep.mubr.f32.mxu1 %v3612_v25  ;;  %425 = vmatprep.mubr.f32.mxu0 %v3612_v25 }
 0x145   :  { %2815 = vmatprep.subr.bf16.mxu1 %v3753_v1  ;;  %2847 = vmatprep.subr.bf16.mxu0 %v3755_v2 }
 0x146   :  { %349 = vmatmul.mubr.f32.gmra.mrb[2].mxu1 %v3386_v15  ;;  %426 = vmatmul.mubr.f32.gmra.mrb[4].mxu0 %v3386_v15  ;;  %v3825_v15 = vpack.c.bf16 %v495_v5, %v491_v4 }
 0x147   :  { %2817 = vmatpush1.bf16.msra.mxu1 %v3759_v6  ;;  %2849 = vmatpush1.bf16.msra.mxu0 %v3761_v7 }
 0x148   :  { %2819 = vmatprep.subr.bf16.mxu1 %v3765_v10  ;;  %2851 = vmatprep.subr.bf16.mxu0 %v3767_v11 }
 0x149   :  { %572 = vmatprep.mubr.f32.mxu1 %v3612_v25  ;;  %643 = vmatprep.mubr.f32.mxu0 %v3612_v25 }
 0x14b   :  { %2821 = vmatpush1.bf16.msra.mxu1 %v3773_v19  ;;  %2853 = vmatpush1.bf16.msra.mxu0 %v3775_v20 }
 0x14c   :  { %2823 = vmatprep.subr.bf16.mxu1 %v3779_v23  ;;  %2855 = vmatprep.subr.bf16.mxu0 %v3781_v24 }
 0x14f   :  { %2825 = vmatpush1.bf16.msra.mxu1 %v3787_v32  ;;  %2857 = vmatpush1.bf16.msra.mxu0 %v3789_v33 }
 0x150   :  { %2827 = vmatprep.subr.bf16.mxu1 %v3793_v36  ;;  %2859 = vmatprep.subr.bf16.mxu0 %v3795_v37 }
 0x153   :  { %2829 = vmatpush1.bf16.msra.mxu1 %v3799_v46  ;;  %2861 = vmatpush1.bf16.msra.mxu0 %v3801_v47 }
 0x154   :  { %2831 = vmatprep.subr.bf16.mxu1 %v3805_v50  ;;  %2863 = vmatprep.subr.bf16.mxu0 %v3807_v51 }
 0x157   :  { %2833 = vmatpush1.bf16.msra.mxu1 %v3811_v60  ;;  %2865 = vmatpush1.bf16.msra.mxu0 %v3813_v61 }
 0x158   :  { %2835 = vmatprep.subr.bf16.mxu1 %v3817_v0  ;;  %2867 = vmatprep.subr.bf16.mxu0 %v3819_v3 }
 0x15b   :  { %2837 = vmatpush1.bf16.msra.mxu1 %v3823_v14  ;;  %2869 = vmatpush1.bf16.msra.mxu0 %v3825_v15 }
 0x15c   :  { %2839 = vmatprep.subr.bf16.mxu1 %v3829_v17  ;;  %2871 = vmatprep.subr.bf16.mxu0 %v3831_v18 }
 0x15f   :  { %2841 = vmatpush1.bf16.msra.mxu1 %v3835_v27  ;;  %2873 = vmatpush1.bf16.msra.mxu0 %v3837_v28 }
 0x160   :  { %2875 = vmatprep.subr.bf16.mxu1 %v3740_v40  ;;  %2907 = vmatprep.subr.bf16.mxu0 %v3742_v43 }
 0x162   :  { %573 = vmatmul.mubr.f32.vlgmr.msra.gmra.mrb[4].mxu1 %v3612_v25  ;;  %644 = vmatmul.mubr.f32.vlgmr.msra.gmra.mrb[6].mxu0 %v3612_v25 }
 0x163   :  { %2877 = vmatpush1.bf16.msra.mxu1 %v3749_v57  ;;  %2909 = vmatpush1.bf16.msra.mxu0 %v3751_v58 }
 0x164   :  { %2879 = vmatprep.subr.bf16.mxu1 %v3753_v1  ;;  %2911 = vmatprep.subr.bf16.mxu0 %v3755_v2 }
 0x165   :  { %814 = vmatprep.mubr.f32.mxu1 %v3612_v25  ;;  %885 = vmatprep.mubr.f32.mxu0 %v3612_v25 }
 0x167   :  { %2881 = vmatpush1.bf16.msra.mxu1 %v3759_v6  ;;  %2913 = vmatpush1.bf16.msra.mxu0 %v3761_v7 }
 0x168   :  { %2883 = vmatprep.subr.bf16.mxu1 %v3765_v10  ;;  %2915 = vmatprep.subr.bf16.mxu0 %v3767_v11 }
 0x16b   :  { %2885 = vmatpush1.bf16.msra.mxu1 %v3773_v19  ;;  %2917 = vmatpush1.bf16.msra.mxu0 %v3775_v20 }
 0x16c   :  { %2887 = vmatprep.subr.bf16.mxu1 %v3779_v23  ;;  %2919 = vmatprep.subr.bf16.mxu0 %v3781_v24 }
 0x16f   :  { %2889 = vmatpush1.bf16.msra.mxu1 %v3787_v32  ;;  %2921 = vmatpush1.bf16.msra.mxu0 %v3789_v33 }
 0x170   :  { %2891 = vmatprep.subr.bf16.mxu1 %v3793_v36  ;;  %2923 = vmatprep.subr.bf16.mxu0 %v3795_v37 }
 0x173   :  { %2893 = vmatpush1.bf16.msra.mxu1 %v3799_v46  ;;  %2925 = vmatpush1.bf16.msra.mxu0 %v3801_v47 }
 0x174   :  { %2895 = vmatprep.subr.bf16.mxu1 %v3805_v50  ;;  %2927 = vmatprep.subr.bf16.mxu0 %v3807_v51 }
 0x177   :  { %2897 = vmatpush1.bf16.msra.mxu1 %v3811_v60  ;;  %2929 = vmatpush1.bf16.msra.mxu0 %v3813_v61 }
 0x178   :  { %2899 = vmatprep.subr.bf16.mxu1 %v3817_v0  ;;  %2931 = vmatprep.subr.bf16.mxu0 %v3819_v3 }
 0x17b   :  { %2901 = vmatpush1.bf16.msra.mxu1 %v3823_v14  ;;  %2933 = vmatpush1.bf16.msra.mxu0 %v3825_v15 }
 0x17c   :  { %2903 = vmatprep.subr.bf16.mxu1 %v3829_v17  ;;  %2935 = vmatprep.subr.bf16.mxu0 %v3831_v18 }
 0x17f   :  { %2905 = vmatpush1.bf16.msra.mxu1 %v3835_v27  ;;  %2937 = vmatpush1.bf16.msra.mxu0 %v3837_v28 }
 0x180   :  { %2939 = vmatprep.subr.bf16.mxu1 %v3740_v40  ;;  %2971 = vmatprep.subr.bf16.mxu0 %v3742_v43 }
 0x215   :  { %v344_v48 = vpop.f32.mrb[0].mxu1  ;;  %v421_v49 = vpop.f32.mrb[2].mxu0 }
 0x216   :  { %v345_v52 = vadd.f32 %v344_v48, %v261_v41  ;;  %v422_v53 = vadd.f32 %v421_v49, %v269_v42  ;;  %v346_v54 = vpop.f32.mrb[1].mxu1  ;;  %v423_v55 = vpop.f32.mrb[3].mxu0 }
 0x217   :  { %v347_v56 = vadd.f32 %v346_v54, %v265_v44  ;;  %v424_v59 = vadd.f32 %v423_v55, %v273_v45 }
 0x218   :  { %432 = vst [vmem:[#allocation2] sm:$0xff] %v345_v52  ;;  %434 = vst [vmem:[#allocation2 + $0x10] sm:$0xff] %v422_v53 }
 0x219   :  { %433 = vst [vmem:[#allocation2 + $0x8] sm:$0xff] %v347_v56  ;;  %435 = vst [vmem:[#allocation2 + $0x18] sm:$0xff] %v424_v59  ;;  %v350_v62 = vpop.f32.mrb[2].mxu1  ;;  %v427_v63 = vpop.f32.mrb[4].mxu0 }
 0x21a   :  { %v351_v4 = vadd.f32 %v350_v62, %v261_v41  ;;  %v428_v5 = vadd.f32 %v427_v63, %v269_v42  ;;  %v352_v8 = vpop.f32.mrb[3].mxu1  ;;  %v429_v9 = vpop.f32.mrb[5].mxu0 }
 0x21b   :  { %v353_v12 = vadd.f32 %v352_v8, %v265_v44  ;;  %v430_v13 = vadd.f32 %v429_v9, %v273_v45 }
 0x21c   :  { %437 = vst [vmem:[#allocation2 + $0x20] sm:$0xff] %v351_v4  ;;  %439 = vst [vmem:[#allocation2 + $0x30] sm:$0xff] %v428_v5 }
 0x21d   :  { %438 = vst [vmem:[#allocation2 + $0x28] sm:$0xff] %v353_v12  ;;  %440 = vst [vmem:[#allocation2 + $0x38] sm:$0xff] %v430_v13 }
 0x220   :  { %v505_v52 = vld [vmem:[#allocation2] ss:$8 sm:$0xf] }
 0x224   :  { %v507_v53 = vld [vmem:[#allocation2 + $0x20] ss:$8 sm:$0xf] }
 0x235   :  { %v574_v29 = vpop.f32.mrb[4].mxu1  ;;  %v645_v31 = vpop.f32.mrb[6].mxu0 }
 0x236   :  { %v576_v34 = vpop.f32.mrb[5].mxu1  ;;  %v647_v35 = vpop.f32.mrb[7].mxu0 }
 0x237   :  { %v654_v38 = vcombine.low %v574_v29, %v576_v34  ;;  %v655_v39 = vcombine.low %v645_v31, %v647_v35 }
 0x239   :  { %v662_v41 = vrot.slane %v654_v38, %v3884_v26  ;;  %v669_v42 = vrot.slane %v655_v39, %v3884_v26 }
 0x23b   :  { %v670_v44 = vcombine.low %v662_v41, %v669_v42  ;;  %v671_v45 = vcombine.high %v662_v41, %v669_v42 }
 0x23d   :  { %v678_v48 = vrot.slane %v670_v44, %v3884_v26  ;;  %v685_v49 = vrot.slane %v671_v45, %v3884_v26 }
 0x23f   :  { %v688_v30 = vadd.f32 %v678_v48, %v505_v52  ;;  %v689_v54 = vadd.f32 %v685_v49, %v507_v53 }
 0x241   :  { %v690_v55 = vmul.f32 0.5, %v688_v30  ;;  %v691_v56 = vmul.f32 0.5, %v689_v54  ;;  %v700_v59 = vrot.slane %v688_v30, 3  ;;  %v701_v62 = vrot.slane %v689_v54, 3 }
 0x243   :  { %3387 = vtanh.f32 %v690_v55 }
 0x244   :  { %3389 = vtanh.f32 %v691_v56 }
 0x245   :  { %3391 = vtanh.f32 %v700_v59 }
 0x246   :  { %3393 = vtanh.f32 %v701_v62 }
 0x24d   :  { %v3388_v63 = vpop.eup %3387 }
 0x24e   :  { %v3390_v4 = vpop.eup %3389  ;;  %v694_v5 = vadd.f32 1.0, %v3388_v63 }
 0x24f   :  { %v695_v8 = vadd.f32 1.0, %v3390_v4  ;;  %v3392_v16 = vpop.eup %3391 }
 0x250   :  { %v696_v9 = vmul.f32 0.5, %v694_v5  ;;  %v3394_v22 = vpop.eup %3393 }
 0x251   :  { %v697_v12 = vmul.f32 0.5, %v695_v8 }
 0x252   :  { %v708_v13 = vrot.slane %v696_v9, 1  ;;  %v714_v31 = vmul.f32 %v3392_v16, %v696_v9  ;;  %v720_v41 = vrot.slane %v696_v9, 2  ;;  %v729_v16 = vld [vmem:[#allocation2 + $0x1] ss:$8 sm:$0xf] }
 0x253   :  { %v709_v21 = vrot.slane %v697_v12, 1  ;;  %v715_v35 = vmul.f32 %v3394_v22, %v697_v12  ;;  %v721_v44 = vrot.slane %v697_v12, 2 }
 0x254   :  { %v712_v29 = vmul.f32 0.0, %v708_v13 }
 0x255   :  { %v713_v34 = vmul.f32 0.0, %v709_v21  ;;  %v731_v21 = vld [vmem:[#allocation2 + $0x21] ss:$8 sm:$0xf] }
 0x256   :  { %v3890_v38 = vadd.f32 %v714_v31, %v712_v29 }
 0x257   :  { %v3892_v39 = vadd.f32 %v715_v35, %v713_v34 }
 0x258   :  { %3395 = vtanh.f32 %v3890_v38 }
 0x259   :  { %3397 = vtanh.f32 %v3892_v39 }
 0x262   :  { %v3396_v42 = vpop.eup %3395 }
 0x263   :  { %v3398_v45 = vpop.eup %3397  ;;  %v724_v48 = vmul.f32 %v3396_v42, %v720_v41 }
 0x264   :  { %v725_v49 = vmul.f32 %v3398_v45, %v721_v44 }
 0x265   :  { %726 = vst [vmem:[#allocation3] sm:$0x1] %v724_v48 }
 0x266   :  { %727 = vst [vmem:[#allocation3 + $0x8] sm:$0x1] %v725_v49  ;;  %v734_v52 = vcombine.low %v724_v48, %v725_v49 }
 0x268   :  { %v741_v53 = vrot.slane %v734_v52, %v3884_v26 }
 0x26a   :  { %v748_v30 = vrot.slane %v741_v53, %v3884_v26 }
 0x26c   :  { %815 = vmatmul.mubr.f32.vlgmr.msra.gmra.mrb[6].mxu1 %v748_v30  ;;  %886 = vmatmul.mubr.f32.vlgmr.msra.gmra.mrb[8].mxu0 %v748_v30 }
 0x26d   :  { %2941 = vmatpush1.bf16.msra.mxu1 %v3749_v57  ;;  %2973 = vmatpush1.bf16.msra.mxu0 %v3751_v58 }
 0x26e   :  { %2943 = vmatprep.subr.bf16.mxu1 %v3753_v1  ;;  %2975 = vmatprep.subr.bf16.mxu0 %v3755_v2 }
 0x26f   :  { %1056 = vmatprep.mubr.f32.mxu1 %v3612_v25  ;;  %1127 = vmatprep.mubr.f32.mxu0 %v3612_v25 }
 0x271   :  { %2945 = vmatpush1.bf16.msra.mxu1 %v3759_v6  ;;  %2977 = vmatpush1.bf16.msra.mxu0 %v3761_v7 }
 0x272   :  { %2947 = vmatprep.subr.bf16.mxu1 %v3765_v10  ;;  %2979 = vmatprep.subr.bf16.mxu0 %v3767_v11 }
 0x275   :  { %2949 = vmatpush1.bf16.msra.mxu1 %v3773_v19  ;;  %2981 = vmatpush1.bf16.msra.mxu0 %v3775_v20 }
 0x276   :  { %2951 = vmatprep.subr.bf16.mxu1 %v3779_v23  ;;  %2983 = vmatprep.subr.bf16.mxu0 %v3781_v24 }
 0x279   :  { %2953 = vmatpush1.bf16.msra.mxu1 %v3787_v32  ;;  %2985 = vmatpush1.bf16.msra.mxu0 %v3789_v33 }
 0x27a   :  { %2955 = vmatprep.subr.bf16.mxu1 %v3793_v36  ;;  %2987 = vmatprep.subr.bf16.mxu0 %v3795_v37 }
 0x27d   :  { %2957 = vmatpush1.bf16.msra.mxu1 %v3799_v46  ;;  %2989 = vmatpush1.bf16.msra.mxu0 %v3801_v47 }
 0x27e   :  { %2959 = vmatprep.subr.bf16.mxu1 %v3805_v50  ;;  %2991 = vmatprep.subr.bf16.mxu0 %v3807_v51 }
 0x281   :  { %2961 = vmatpush1.bf16.msra.mxu1 %v3811_v60  ;;  %2993 = vmatpush1.bf16.msra.mxu0 %v3813_v61 }
 0x282   :  { %2963 = vmatprep.subr.bf16.mxu1 %v3817_v0  ;;  %2995 = vmatprep.subr.bf16.mxu0 %v3819_v3 }
 0x285   :  { %2965 = vmatpush1.bf16.msra.mxu1 %v3823_v14  ;;  %2997 = vmatpush1.bf16.msra.mxu0 %v3825_v15 }
 0x286   :  { %2967 = vmatprep.subr.bf16.mxu1 %v3829_v17  ;;  %2999 = vmatprep.subr.bf16.mxu0 %v3831_v18 }
 0x289   :  { %2969 = vmatpush1.bf16.msra.mxu1 %v3835_v27  ;;  %3001 = vmatpush1.bf16.msra.mxu0 %v3837_v28 }
 0x28a   :  { %3003 = vmatprep.subr.bf16.mxu1 %v3740_v40  ;;  %3035 = vmatprep.subr.bf16.mxu0 %v3742_v43 }
 0x33f   :  { %v816_v54 = vpop.f32.mrb[6].mxu1  ;;  %v887_v55 = vpop.f32.mrb[8].mxu0 }
 0x340   :  { %v818_v56 = vpop.f32.mrb[7].mxu1  ;;  %v889_v59 = vpop.f32.mrb[9].mxu0 }
 0x341   :  { %v896_v62 = vcombine.low %v816_v54, %v818_v56  ;;  %v897_v63 = vcombine.low %v887_v55, %v889_v59 }
 0x343   :  { %v904_v4 = vrot.slane %v896_v62, %v3884_v26  ;;  %v911_v5 = vrot.slane %v897_v63, %v3884_v26 }
 0x345   :  { %v912_v8 = vcombine.low %v904_v4, %v911_v5  ;;  %v913_v9 = vcombine.high %v904_v4, %v911_v5 }
 0x347   :  { %v920_v12 = vrot.slane %v912_v8, %v3884_v26  ;;  %v927_v13 = vrot.slane %v913_v9, %v3884_v26 }
 0x349   :  { %v930_v22 = vadd.f32 %v920_v12, %v729_v16  ;;  %v931_v29 = vadd.f32 %v927_v13, %v731_v21 }
 0x34b   :  { %v932_v31 = vmul.f32 0.5, %v930_v22  ;;  %v933_v34 = vmul.f32 0.5, %v931_v29  ;;  %v942_v35 = vrot.slane %v930_v22, 3  ;;  %v943_v41 = vrot.slane %v931_v29, 3 }
 0x34d   :  { %3399 = vtanh.f32 %v932_v31 }
 0x34e   :  { %3401 = vtanh.f32 %v933_v34 }
 0x34f   :  { %3403 = vtanh.f32 %v942_v35 }
 0x350   :  { %3405 = vtanh.f32 %v943_v41 }
 0x357   :  { %v3400_v42 = vpop.eup %3399 }
 0x358   :  { %v3402_v44 = vpop.eup %3401  ;;  %v936_v45 = vadd.f32 1.0, %v3400_v42 }
 0x359   :  { %v937_v48 = vadd.f32 1.0, %v3402_v44  ;;  %v3404_v30 = vpop.eup %3403 }
 0x35a   :  { %v938_v49 = vmul.f32 0.5, %v936_v45  ;;  %v3406_v55 = vpop.eup %3405 }
 0x35b   :  { %v939_v52 = vmul.f32 0.5, %v937_v48 }
 0x35c   :  { %v950_v53 = vrot.slane %v938_v49, 1  ;;  %v956_v59 = vmul.f32 %v3404_v30, %v938_v49  ;;  %v962_v8 = vrot.slane %v938_v49, 2  ;;  %v971_v30 = vld [vmem:[#allocation2 + $0x2] ss:$8 sm:$0xf] }
 0x35d   :  { %v951_v54 = vrot.slane %v939_v52, 1  ;;  %v957_v63 = vmul.f32 %v3406_v55, %v939_v52  ;;  %v963_v12 = vrot.slane %v939_v52, 2 }
 0x35e   :  { %v954_v56 = vmul.f32 %v950_v53, %v3890_v38 }
 0x35f   :  { %v955_v62 = vmul.f32 %v951_v54, %v3892_v39  ;;  %v973_v54 = vld [vmem:[#allocation2 + $0x22] ss:$8 sm:$0xf] }
 0x360   :  { %v3938_v4 = vadd.f32 %v956_v59, %v954_v56 }
 0x361   :  { %v3940_v5 = vadd.f32 %v957_v63, %v955_v62 }
 0x362   :  { %3407 = vtanh.f32 %v3938_v4 }
 0x363   :  { %3409 = vtanh.f32 %v3940_v5 }
 0x36c   :  { %v3408_v9 = vpop.eup %3407 }
 0x36d   :  { %v3410_v13 = vpop.eup %3409  ;;  %v966_v16 = vmul.f32 %v3408_v9, %v962_v8 }
 0x36e   :  { %v967_v21 = vmul.f32 %v3410_v13, %v963_v12 }
 0x36f   :  { %968 = vst [vmem:[#allocation3 + $0x1] sm:$0x1] %v966_v16 }
 0x370   :  { %969 = vst [vmem:[#allocation3 + $0x9] sm:$0x1] %v967_v21  ;;  %v976_v38 = vcombine.low %v966_v16, %v967_v21 }
 0x372   :  { %v983_v39 = vrot.slane %v976_v38, %v3884_v26 }
 0x374   :  { %v990_v22 = vrot.slane %v983_v39, %v3884_v26 }
 0x376   :  { %1057 = vmatmul.mubr.f32.vlgmr.msra.gmra.mrb[8].mxu1 %v990_v22  ;;  %1128 = vmatmul.mubr.f32.vlgmr.msra.gmra.mrb[10].mxu0 %v990_v22 }
 0x377   :  { %3005 = vmatpush1.bf16.msra.mxu1 %v3749_v57  ;;  %3037 = vmatpush1.bf16.msra.mxu0 %v3751_v58 }
 0x378   :  { %3007 = vmatprep.subr.bf16.mxu1 %v3753_v1  ;;  %3039 = vmatprep.subr.bf16.mxu0 %v3755_v2 }
 0x379   :  { %1298 = vmatprep.mubr.f32.mxu1 %v3612_v25  ;;  %1369 = vmatprep.mubr.f32.mxu0 %v3612_v25 }
 0x37b   :  { %3009 = vmatpush1.bf16.msra.mxu1 %v3759_v6  ;;  %3041 = vmatpush1.bf16.msra.mxu0 %v3761_v7 }
 0x37c   :  { %3011 = vmatprep.subr.bf16.mxu1 %v3765_v10  ;;  %3043 = vmatprep.subr.bf16.mxu0 %v3767_v11 }
 0x37f   :  { %3013 = vmatpush1.bf16.msra.mxu1 %v3773_v19  ;;  %3045 = vmatpush1.bf16.msra.mxu0 %v3775_v20 }
 0x380   :  { %3015 = vmatprep.subr.bf16.mxu1 %v3779_v23  ;;  %3047 = vmatprep.subr.bf16.mxu0 %v3781_v24 }
 0x383   :  { %3017 = vmatpush1.bf16.msra.mxu1 %v3787_v32  ;;  %3049 = vmatpush1.bf16.msra.mxu0 %v3789_v33 }
 0x384   :  { %3019 = vmatprep.subr.bf16.mxu1 %v3793_v36  ;;  %3051 = vmatprep.subr.bf16.mxu0 %v3795_v37 }
 0x387   :  { %3021 = vmatpush1.bf16.msra.mxu1 %v3799_v46  ;;  %3053 = vmatpush1.bf16.msra.mxu0 %v3801_v47 }
 0x388   :  { %3023 = vmatprep.subr.bf16.mxu1 %v3805_v50  ;;  %3055 = vmatprep.subr.bf16.mxu0 %v3807_v51 }
 0x38b   :  { %3025 = vmatpush1.bf16.msra.mxu1 %v3811_v60  ;;  %3057 = vmatpush1.bf16.msra.mxu0 %v3813_v61 }
 0x38c   :  { %3027 = vmatprep.subr.bf16.mxu1 %v3817_v0  ;;  %3059 = vmatprep.subr.bf16.mxu0 %v3819_v3 }
 0x38f   :  { %3029 = vmatpush1.bf16.msra.mxu1 %v3823_v14  ;;  %3061 = vmatpush1.bf16.msra.mxu0 %v3825_v15 }
 0x390   :  { %3031 = vmatprep.subr.bf16.mxu1 %v3829_v17  ;;  %3063 = vmatprep.subr.bf16.mxu0 %v3831_v18 }
 0x393   :  { %3033 = vmatpush1.bf16.msra.mxu1 %v3835_v27  ;;  %3065 = vmatpush1.bf16.msra.mxu0 %v3837_v28 }
 0x394   :  { %3067 = vmatprep.subr.bf16.mxu1 %v3740_v40  ;;  %3099 = vmatprep.subr.bf16.mxu0 %v3742_v43 }
 0x449   :  { %v1058_v29 = vpop.f32.mrb[8].mxu1  ;;  %v1129_v31 = vpop.f32.mrb[10].mxu0 }
 0x44a   :  { %v1060_v34 = vpop.f32.mrb[9].mxu1  ;;  %v1131_v35 = vpop.f32.mrb[11].mxu0 }
 0x44b   :  { %v1138_v41 = vcombine.low %v1058_v29, %v1060_v34  ;;  %v1139_v42 = vcombine.low %v1129_v31, %v1131_v35 }
 0x44d   :  { %v1146_v44 = vrot.slane %v1138_v41, %v3884_v26  ;;  %v1153_v45 = vrot.slane %v1139_v42, %v3884_v26 }
 0x44f   :  { %v1154_v48 = vcombine.low %v1146_v44, %v1153_v45  ;;  %v1155_v49 = vcombine.high %v1146_v44, %v1153_v45 }
 0x451   :  { %v1162_v52 = vrot.slane %v1154_v48, %v3884_v26  ;;  %v1169_v53 = vrot.slane %v1155_v49, %v3884_v26 }
 0x453   :  { %v1172_v55 = vadd.f32 %v1162_v52, %v971_v30  ;;  %v1173_v56 = vadd.f32 %v1169_v53, %v973_v54 }
 0x455   :  { %v1174_v59 = vmul.f32 0.5, %v1172_v55  ;;  %v1175_v62 = vmul.f32 0.5, %v1173_v56  ;;  %v1184_v63 = vrot.slane %v1172_v55, 3  ;;  %v1185_v8 = vrot.slane %v1173_v56, 3 }
 0x457   :  { %3411 = vtanh.f32 %v1174_v59 }
 0x458   :  { %3413 = vtanh.f32 %v1175_v62 }
 0x459   :  { %3415 = vtanh.f32 %v1184_v63 }
 0x45a   :  { %3417 = vtanh.f32 %v1185_v8 }
 0x461   :  { %v3412_v9 = vpop.eup %3411 }
 0x462   :  { %v3414_v12 = vpop.eup %3413  ;;  %v1178_v13 = vadd.f32 1.0, %v3412_v9 }
 0x463   :  { %v1179_v16 = vadd.f32 1.0, %v3414_v12  ;;  %v3416_v22 = vpop.eup %3415 }
 0x464   :  { %v1180_v21 = vmul.f32 0.5, %v1178_v13  ;;  %v3418_v31 = vpop.eup %3417 }
 0x465   :  { %v1181_v38 = vmul.f32 0.5, %v1179_v16 }
 0x466   :  { %v1192_v39 = vrot.slane %v1180_v21, 1  ;;  %v1198_v35 = vmul.f32 %v3416_v22, %v1180_v21  ;;  %v1204_v48 = vrot.slane %v1180_v21, 2  ;;  %v1213_v22 = vld [vmem:[#allocation2 + $0x3] ss:$8 sm:$0xf] }
 0x467   :  { %v1193_v29 = vrot.slane %v1181_v38, 1  ;;  %v1199_v42 = vmul.f32 %v3418_v31, %v1181_v38  ;;  %v1205_v52 = vrot.slane %v1181_v38, 2 }
 0x468   :  { %v1196_v34 = vmul.f32 %v1192_v39, %v3938_v4 }
 0x469   :  { %v1197_v41 = vmul.f32 %v1193_v29, %v3940_v5  ;;  %v1215_v29 = vld [vmem:[#allocation2 + $0x23] ss:$8 sm:$0xf] }
 0x46a   :  { %v3986_v44 = vadd.f32 %v1198_v35, %v1196_v34 }
 0x46b   :  { %v3988_v45 = vadd.f32 %v1199_v42, %v1197_v41 }
 0x46c   :  { %3419 = vtanh.f32 %v3986_v44 }
 0x46d   :  { %3421 = vtanh.f32 %v3988_v45 }
 0x476   :  { %v3420_v49 = vpop.eup %3419 }
 0x477   :  { %v3422_v53 = vpop.eup %3421  ;;  %v1208_v30 = vmul.f32 %v3420_v49, %v1204_v48 }
 0x478   :  { %v1209_v54 = vmul.f32 %v3422_v53, %v1205_v52 }
 0x479   :  { %1210 = vst [vmem:[#allocation3 + $0x2] sm:$0x1] %v1208_v30 }
 0x47a   :  { %1211 = vst [vmem:[#allocation3 + $0xa] sm:$0x1] %v1209_v54  ;;  %v1218_v4 = vcombine.low %v1208_v30, %v1209_v54 }
 0x47c   :  { %v1225_v5 = vrot.slane %v1218_v4, %v3884_v26 }
 0x47e   :  { %v1232_v55 = vrot.slane %v1225_v5, %v3884_v26 }
 0x480   :  { %1299 = vmatmul.mubr.f32.vlgmr.msra.gmra.mrb[10].mxu1 %v1232_v55  ;;  %1370 = vmatmul.mubr.f32.vlgmr.msra.gmra.mrb[12].mxu0 %v1232_v55 }
 0x481   :  { %3069 = vmatpush1.bf16.msra.mxu1 %v3749_v57  ;;  %3101 = vmatpush1.bf16.msra.mxu0 %v3751_v58 }
 0x482   :  { %3071 = vmatprep.subr.bf16.mxu1 %v3753_v1  ;;  %3103 = vmatprep.subr.bf16.mxu0 %v3755_v2 }
 0x483   :  { %1540 = vmatprep.mubr.f32.mxu1 %v3612_v25  ;;  %1611 = vmatprep.mubr.f32.mxu0 %v3612_v25 }
 0x485   :  { %3073 = vmatpush1.bf16.msra.mxu1 %v3759_v6  ;;  %3105 = vmatpush1.bf16.msra.mxu0 %v3761_v7 }
 0x486   :  { %3075 = vmatprep.subr.bf16.mxu1 %v3765_v10  ;;  %3107 = vmatprep.subr.bf16.mxu0 %v3767_v11 }
 0x489   :  { %3077 = vmatpush1.bf16.msra.mxu1 %v3773_v19  ;;  %3109 = vmatpush1.bf16.msra.mxu0 %v3775_v20 }
 0x48a   :  { %3079 = vmatprep.subr.bf16.mxu1 %v3779_v23  ;;  %3111 = vmatprep.subr.bf16.mxu0 %v3781_v24 }
 0x48d   :  { %3081 = vmatpush1.bf16.msra.mxu1 %v3787_v32  ;;  %3113 = vmatpush1.bf16.msra.mxu0 %v3789_v33 }
 0x48e   :  { %3083 = vmatprep.subr.bf16.mxu1 %v3793_v36  ;;  %3115 = vmatprep.subr.bf16.mxu0 %v3795_v37 }
 0x491   :  { %3085 = vmatpush1.bf16.msra.mxu1 %v3799_v46  ;;  %3117 = vmatpush1.bf16.msra.mxu0 %v3801_v47 }
 0x492   :  { %3087 = vmatprep.subr.bf16.mxu1 %v3805_v50  ;;  %3119 = vmatprep.subr.bf16.mxu0 %v3807_v51 }
 0x495   :  { %3089 = vmatpush1.bf16.msra.mxu1 %v3811_v60  ;;  %3121 = vmatpush1.bf16.msra.mxu0 %v3813_v61 }
 0x496   :  { %3091 = vmatprep.subr.bf16.mxu1 %v3817_v0  ;;  %3123 = vmatprep.subr.bf16.mxu0 %v3819_v3 }
 0x499   :  { %3093 = vmatpush1.bf16.msra.mxu1 %v3823_v14  ;;  %3125 = vmatpush1.bf16.msra.mxu0 %v3825_v15 }
 0x49a   :  { %3095 = vmatprep.subr.bf16.mxu1 %v3829_v17  ;;  %3127 = vmatprep.subr.bf16.mxu0 %v3831_v18 }
 0x49d   :  { %3097 = vmatpush1.bf16.msra.mxu1 %v3835_v27  ;;  %3129 = vmatpush1.bf16.msra.mxu0 %v3837_v28 }
 0x49e   :  { %3131 = vmatprep.subr.bf16.mxu1 %v3740_v40  ;;  %3163 = vmatprep.subr.bf16.mxu0 %v3742_v43 }
 0x553   :  { %v1300_v56 = vpop.f32.mrb[10].mxu1  ;;  %v1371_v59 = vpop.f32.mrb[12].mxu0 }
 0x554   :  { %v1302_v62 = vpop.f32.mrb[11].mxu1  ;;  %v1373_v63 = vpop.f32.mrb[13].mxu0 }
 0x555   :  { %v1380_v8 = vcombine.low %v1300_v56, %v1302_v62  ;;  %v1381_v9 = vcombine.low %v1371_v59, %v1373_v63 }
 0x557   :  { %v1388_v12 = vrot.slane %v1380_v8, %v3884_v26  ;;  %v1395_v13 = vrot.slane %v1381_v9, %v3884_v26 }
 0x559   :  { %v1396_v16 = vcombine.low %v1388_v12, %v1395_v13  ;;  %v1397_v21 = vcombine.high %v1388_v12, %v1395_v13 }
 0x55b   :  { %v1404_v38 = vrot.slane %v1396_v16, %v3884_v26  ;;  %v1411_v39 = vrot.slane %v1397_v21, %v3884_v26 }
 0x55d   :  { %v1414_v31 = vadd.f32 %v1404_v38, %v1213_v22  ;;  %v1415_v34 = vadd.f32 %v1411_v39, %v1215_v29 }
 0x55f   :  { %v1416_v35 = vmul.f32 0.5, %v1414_v31  ;;  %v1417_v41 = vmul.f32 0.5, %v1415_v34  ;;  %v1426_v42 = vrot.slane %v1414_v31, 3  ;;  %v1427_v48 = vrot.slane %v1415_v34, 3 }
 0x561   :  { %3423 = vtanh.f32 %v1416_v35 }
 0x562   :  { %3425 = vtanh.f32 %v1417_v41 }
 0x563   :  { %3427 = vtanh.f32 %v1426_v42 }
 0x564   :  { %3429 = vtanh.f32 %v1427_v48 }
 0x56b   :  { %v3424_v49 = vpop.eup %3423 }
 0x56c   :  { %v3426_v52 = vpop.eup %3425  ;;  %v1420_v53 = vadd.f32 1.0, %v3424_v49 }
 0x56d   :  { %v1421_v30 = vadd.f32 1.0, %v3426_v52  ;;  %v3428_v55 = vpop.eup %3427 }
 0x56e   :  { %v1422_v54 = vmul.f32 0.5, %v1420_v53  ;;  %v3430_v59 = vpop.eup %3429 }
 0x56f   :  { %v1423_v4 = vmul.f32 0.5, %v1421_v30 }
 0x570   :  { %v1434_v5 = vrot.slane %v1422_v54, 1  ;;  %v1440_v63 = vmul.f32 %v3428_v55, %v1422_v54  ;;  %v1446_v16 = vrot.slane %v1422_v54, 2  ;;  %v1455_v55 = vld [vmem:[#allocation2 + $0x4] ss:$8 sm:$0xf] }
 0x571   :  { %v1435_v56 = vrot.slane %v1423_v4, 1  ;;  %v1441_v9 = vmul.f32 %v3430_v59, %v1423_v4  ;;  %v1447_v38 = vrot.slane %v1423_v4, 2 }
 0x572   :  { %v1438_v62 = vmul.f32 %v1434_v5, %v3986_v44 }
 0x573   :  { %v1439_v8 = vmul.f32 %v1435_v56, %v3988_v45  ;;  %v1457_v56 = vld [vmem:[#allocation2 + $0x24] ss:$8 sm:$0xf] }
 0x574   :  { %v4034_v12 = vadd.f32 %v1440_v63, %v1438_v62 }
 0x575   :  { %v4036_v13 = vadd.f32 %v1441_v9, %v1439_v8 }
 0x576   :  { %3431 = vtanh.f32 %v4034_v12 }
 0x577   :  { %3433 = vtanh.f32 %v4036_v13 }
 0x580   :  { %v3432_v21 = vpop.eup %3431 }
 0x581   :  { %v3434_v39 = vpop.eup %3433  ;;  %v1450_v22 = vmul.f32 %v3432_v21, %v1446_v16 }
 0x582   :  { %v1451_v29 = vmul.f32 %v3434_v39, %v1447_v38 }
 0x583   :  { %1452 = vst [vmem:[#allocation3 + $0x3] sm:$0x1] %v1450_v22 }
 0x584   :  { %1453 = vst [vmem:[#allocation3 + $0xb] sm:$0x1] %v1451_v29  ;;  %v1460_v44 = vcombine.low %v1450_v22, %v1451_v29 }
 0x586   :  { %v1467_v45 = vrot.slane %v1460_v44, %v3884_v26 }
 0x588   :  { %v1474_v31 = vrot.slane %v1467_v45, %v3884_v26 }
 0x58a   :  { %1541 = vmatmul.mubr.f32.vlgmr.msra.gmra.mrb[12].mxu1 %v1474_v31  ;;  %1612 = vmatmul.mubr.f32.vlgmr.msra.gmra.mrb[14].mxu0 %v1474_v31 }
 0x58b   :  { %3133 = vmatpush1.bf16.msra.mxu1 %v3749_v57  ;;  %3165 = vmatpush1.bf16.msra.mxu0 %v3751_v58 }
 0x58c   :  { %3135 = vmatprep.subr.bf16.mxu1 %v3753_v1  ;;  %3167 = vmatprep.subr.bf16.mxu0 %v3755_v2 }
 0x58d   :  { %1782 = vmatprep.mubr.f32.mxu1 %v3612_v25  ;;  %1853 = vmatprep.mubr.f32.mxu0 %v3612_v25 }
 0x58f   :  { %3137 = vmatpush1.bf16.msra.mxu1 %v3759_v6  ;;  %3169 = vmatpush1.bf16.msra.mxu0 %v3761_v7 }
 0x590   :  { %3139 = vmatprep.subr.bf16.mxu1 %v3765_v10  ;;  %3171 = vmatprep.subr.bf16.mxu0 %v3767_v11 }
 0x593   :  { %3141 = vmatpush1.bf16.msra.mxu1 %v3773_v19  ;;  %3173 = vmatpush1.bf16.msra.mxu0 %v3775_v20 }
 0x594   :  { %3143 = vmatprep.subr.bf16.mxu1 %v3779_v23  ;;  %3175 = vmatprep.subr.bf16.mxu0 %v3781_v24 }
 0x597   :  { %3145 = vmatpush1.bf16.msra.mxu1 %v3787_v32  ;;  %3177 = vmatpush1.bf16.msra.mxu0 %v3789_v33 }
 0x598   :  { %3147 = vmatprep.subr.bf16.mxu1 %v3793_v36  ;;  %3179 = vmatprep.subr.bf16.mxu0 %v3795_v37 }
 0x59b   :  { %3149 = vmatpush1.bf16.msra.mxu1 %v3799_v46  ;;  %3181 = vmatpush1.bf16.msra.mxu0 %v3801_v47 }
 0x59c   :  { %3151 = vmatprep.subr.bf16.mxu1 %v3805_v50  ;;  %3183 = vmatprep.subr.bf16.mxu0 %v3807_v51 }
 0x59f   :  { %3153 = vmatpush1.bf16.msra.mxu1 %v3811_v60  ;;  %3185 = vmatpush1.bf16.msra.mxu0 %v3813_v61 }
 0x5a0   :  { %3155 = vmatprep.subr.bf16.mxu1 %v3817_v0  ;;  %3187 = vmatprep.subr.bf16.mxu0 %v3819_v3 }
 0x5a3   :  { %3157 = vmatpush1.bf16.msra.mxu1 %v3823_v14  ;;  %3189 = vmatpush1.bf16.msra.mxu0 %v3825_v15 }
 0x5a4   :  { %3159 = vmatprep.subr.bf16.mxu1 %v3829_v17  ;;  %3191 = vmatprep.subr.bf16.mxu0 %v3831_v18 }
 0x5a7   :  { %3161 = vmatpush1.bf16.msra.mxu1 %v3835_v27  ;;  %3193 = vmatpush1.bf16.msra.mxu0 %v3837_v28 }
 0x5a8   :  { %3195 = vmatprep.subr.bf16.mxu1 %v3740_v40  ;;  %3227 = vmatprep.subr.bf16.mxu0 %v3742_v43 }
 0x65d   :  { %v1542_v34 = vpop.f32.mrb[12].mxu1  ;;  %v1613_v35 = vpop.f32.mrb[14].mxu0 }
 0x65e   :  { %v1544_v41 = vpop.f32.mrb[13].mxu1  ;;  %v1615_v42 = vpop.f32.mrb[15].mxu0 }
 0x65f   :  { %v1622_v48 = vcombine.low %v1542_v34, %v1544_v41  ;;  %v1623_v49 = vcombine.low %v1613_v35, %v1615_v42 }
 0x661   :  { %v1630_v52 = vrot.slane %v1622_v48, %v3884_v26  ;;  %v1637_v53 = vrot.slane %v1623_v49, %v3884_v26 }
 0x663   :  { %v1638_v30 = vcombine.low %v1630_v52, %v1637_v53  ;;  %v1639_v54 = vcombine.high %v1630_v52, %v1637_v53 }
 0x665   :  { %v1646_v4 = vrot.slane %v1638_v30, %v3884_v26  ;;  %v1653_v5 = vrot.slane %v1639_v54, %v3884_v26 }
 0x667   :  { %v1656_v59 = vadd.f32 %v1646_v4, %v1455_v55  ;;  %v1657_v62 = vadd.f32 %v1653_v5, %v1457_v56 }
 0x669   :  { %v1658_v63 = vmul.f32 0.5, %v1656_v59  ;;  %v1659_v8 = vmul.f32 0.5, %v1657_v62  ;;  %v1668_v9 = vrot.slane %v1656_v59, 3  ;;  %v1669_v16 = vrot.slane %v1657_v62, 3 }
 0x66b   :  { %3435 = vtanh.f32 %v1658_v63 }
 0x66c   :  { %3437 = vtanh.f32 %v1659_v8 }
 0x66d   :  { %3439 = vtanh.f32 %v1668_v9 }
 0x66e   :  { %3441 = vtanh.f32 %v1669_v16 }
 0x675   :  { %v3436_v21 = vpop.eup %3435 }
 0x676   :  { %v3438_v38 = vpop.eup %3437  ;;  %v1662_v39 = vadd.f32 1.0, %v3436_v21 }
 0x677   :  { %v1663_v22 = vadd.f32 1.0, %v3438_v38  ;;  %v3440_v31 = vpop.eup %3439 }
 0x678   :  { %v1664_v29 = vmul.f32 0.5, %v1662_v39  ;;  %v3442_v35 = vpop.eup %3441 }
 0x679   :  { %v1665_v44 = vmul.f32 0.5, %v1663_v22 }
 0x67a   :  { %v1676_v45 = vrot.slane %v1664_v29, 1  ;;  %v1682_v42 = vmul.f32 %v3440_v31, %v1664_v29  ;;  %v1688_v30 = vrot.slane %v1664_v29, 2  ;;  %v1697_v31 = vld [vmem:[#allocation2 + $0x5] ss:$8 sm:$0xf] }
 0x67b   :  { %v1677_v34 = vrot.slane %v1665_v44, 1  ;;  %v1683_v49 = vmul.f32 %v3442_v35, %v1665_v44  ;;  %v1689_v4 = vrot.slane %v1665_v44, 2 }
 0x67c   :  { %v1680_v41 = vmul.f32 %v1676_v45, %v4034_v12 }
 0x67d   :  { %v1681_v48 = vmul.f32 %v1677_v34, %v4036_v13 }
 0x67e   :  { %v4082_v52 = vadd.f32 %v1682_v42, %v1680_v41 }
 0x67f   :  { %v4084_v53 = vadd.f32 %v1683_v49, %v1681_v48 }
 0x680   :  { %3443 = vtanh.f32 %v4082_v52 }
 0x681   :  { %3445 = vtanh.f32 %v4084_v53 }
 0x68a   :  { %v3444_v54 = vpop.eup %3443 }
 0x68b   :  { %v3446_v5 = vpop.eup %3445  ;;  %v1692_v55 = vmul.f32 %v3444_v54, %v1688_v30 }
 0x68c   :  { %v1693_v56 = vmul.f32 %v3446_v5, %v1689_v4 }
 0x68d   :  { %1694 = vst [vmem:[#allocation3 + $0x4] sm:$0x1] %v1692_v55 }
 0x68e   :  { %1695 = vst [vmem:[#allocation3 + $0xc] sm:$0x1] %v1693_v56  ;;  %v1702_v12 = vcombine.low %v1692_v55, %v1693_v56 }
 0x690   :  { %v1709_v13 = vrot.slane %v1702_v12, %v3884_v26 }
 0x692   :  { %v1716_v59 = vrot.slane %v1709_v13, %v3884_v26 }
 0x694   :  { %1783 = vmatmul.mubr.f32.vlgmr.msra.gmra.mrb[14].mxu1 %v1716_v59  ;;  %1854 = vmatmul.mubr.f32.vlgmr.msra.gmra.mrb[16].mxu0 %v1716_v59 }
 0x695   :  { %3197 = vmatpush1.bf16.msra.mxu1 %v3749_v57  ;;  %3229 = vmatpush1.bf16.msra.mxu0 %v3751_v58 }
 0x696   :  { %3199 = vmatprep.subr.bf16.mxu1 %v3753_v1  ;;  %3231 = vmatprep.subr.bf16.mxu0 %v3755_v2 }
 0x697   :  { %2024 = vmatprep.mubr.f32.mxu1 %v3612_v25  ;;  %2095 = vmatprep.mubr.f32.mxu0 %v3612_v25 }
 0x699   :  { %3201 = vmatpush1.bf16.msra.mxu1 %v3759_v6  ;;  %3233 = vmatpush1.bf16.msra.mxu0 %v3761_v7 }
 0x69a   :  { %3203 = vmatprep.subr.bf16.mxu1 %v3765_v10  ;;  %3235 = vmatprep.subr.bf16.mxu0 %v3767_v11 }
 0x69d   :  { %3205 = vmatpush1.bf16.msra.mxu1 %v3773_v19  ;;  %3237 = vmatpush1.bf16.msra.mxu0 %v3775_v20 }
 0x69e   :  { %3207 = vmatprep.subr.bf16.mxu1 %v3779_v23  ;;  %3239 = vmatprep.subr.bf16.mxu0 %v3781_v24 }
 0x6a1   :  { %3209 = vmatpush1.bf16.msra.mxu1 %v3787_v32  ;;  %3241 = vmatpush1.bf16.msra.mxu0 %v3789_v33 }
 0x6a2   :  { %3211 = vmatprep.subr.bf16.mxu1 %v3793_v36  ;;  %3243 = vmatprep.subr.bf16.mxu0 %v3795_v37 }
 0x6a5   :  { %3213 = vmatpush1.bf16.msra.mxu1 %v3799_v46  ;;  %3245 = vmatpush1.bf16.msra.mxu0 %v3801_v47 }
 0x6a6   :  { %3215 = vmatprep.subr.bf16.mxu1 %v3805_v50  ;;  %3247 = vmatprep.subr.bf16.mxu0 %v3807_v51 }
 0x6a9   :  { %3217 = vmatpush1.bf16.msra.mxu1 %v3811_v60  ;;  %3249 = vmatpush1.bf16.msra.mxu0 %v3813_v61 }
 0x6aa   :  { %3219 = vmatprep.subr.bf16.mxu1 %v3817_v0  ;;  %3251 = vmatprep.subr.bf16.mxu0 %v3819_v3 }
 0x6ad   :  { %3221 = vmatpush1.bf16.msra.mxu1 %v3823_v14  ;;  %3253 = vmatpush1.bf16.msra.mxu0 %v3825_v15 }
 0x6ae   :  { %3223 = vmatprep.subr.bf16.mxu1 %v3829_v17  ;;  %3255 = vmatprep.subr.bf16.mxu0 %v3831_v18 }
 0x6b1   :  { %3225 = vmatpush1.bf16.msra.mxu1 %v3835_v27  ;;  %3257 = vmatpush1.bf16.msra.mxu0 %v3837_v28 }
 0x6b2   :  { %3259 = vmatprep.subr.bf16.mxu1 %v3740_v40  ;;  %3291 = vmatprep.subr.bf16.mxu0 %v3742_v43  ;;  %v1699_v40 = vld [vmem:[#allocation2 + $0x25] ss:$8 sm:$0xf] }
 0x767   :  { %v1784_v62 = vpop.f32.mrb[14].mxu1  ;;  %v1855_v63 = vpop.f32.mrb[16].mxu0 }
 0x768   :  { %v1786_v8 = vpop.f32.mrb[15].mxu1  ;;  %v1857_v9 = vpop.f32.mrb[17].mxu0 }
 0x769   :  { %v1864_v16 = vcombine.low %v1784_v62, %v1786_v8  ;;  %v1865_v21 = vcombine.low %v1855_v63, %v1857_v9 }
 0x76b   :  { %v1872_v38 = vrot.slane %v1864_v16, %v3884_v26  ;;  %v1879_v39 = vrot.slane %v1865_v21, %v3884_v26 }
 0x76d   :  { %v1880_v22 = vcombine.low %v1872_v38, %v1879_v39  ;;  %v1881_v29 = vcombine.high %v1872_v38, %v1879_v39 }
 0x76f   :  { %v1888_v44 = vrot.slane %v1880_v22, %v3884_v26  ;;  %v1895_v45 = vrot.slane %v1881_v29, %v3884_v26 }
 0x771   :  { %v1898_v34 = vadd.f32 %v1888_v44, %v1697_v31  ;;  %v1899_v43 = vadd.f32 %v1895_v45, %v1699_v40 }
 0x773   :  { %v1900_v35 = vmul.f32 0.5, %v1898_v34  ;;  %v1901_v41 = vmul.f32 0.5, %v1899_v43  ;;  %v1910_v42 = vrot.slane %v1898_v34, 3  ;;  %v1911_v48 = vrot.slane %v1899_v43, 3 }
 0x775   :  { %3447 = vtanh.f32 %v1900_v35 }
 0x776   :  { %3449 = vtanh.f32 %v1901_v41 }
 0x777   :  { %3451 = vtanh.f32 %v1910_v42 }
 0x778   :  { %3453 = vtanh.f32 %v1911_v48 }
 0x77f   :  { %v3448_v49 = vpop.eup %3447 }
 0x780   :  { %v3450_v30 = vpop.eup %3449  ;;  %v1904_v54 = vadd.f32 1.0, %v3448_v49 }
 0x781   :  { %v1905_v4 = vadd.f32 1.0, %v3450_v30  ;;  %v3452_v12 = vpop.eup %3451 }
 0x782   :  { %v1906_v5 = vmul.f32 0.5, %v1904_v54  ;;  %v3454_v59 = vpop.eup %3453 }
 0x783   :  { %v1907_v55 = vmul.f32 0.5, %v1905_v4 }
 0x784   :  { %v1918_v56 = vrot.slane %v1906_v5, 1  ;;  %v1924_v63 = vmul.f32 %v3452_v12, %v1906_v5  ;;  %v1930_v38 = vrot.slane %v1906_v5, 2 }
 0x785   :  { %v1919_v13 = vrot.slane %v1907_v55, 1  ;;  %v1925_v9 = vmul.f32 %v3454_v59, %v1907_v55  ;;  %v1931_v22 = vrot.slane %v1907_v55, 2  ;;  %v2425_v59 = vld [vmem:[#allocation11 + $0x8] sm:$0xff] }
 0x786   :  { %v1922_v62 = vmul.f32 %v1918_v56, %v4082_v52 }
 0x787   :  { %v1923_v8 = vmul.f32 %v1919_v13, %v4084_v53  ;;  %v2424_v13 = vld [vmem:[#allocation11] sm:$0xff] }
 0x788   :  { %v4130_v16 = vadd.f32 %v1924_v63, %v1922_v62  ;;  %v3323_v62 = vpack.c.bf16 %v2425_v59, %v2424_v13  ;;  %v3614_v63 = vmov 0.0|0.0  }
 0x789   :  { %v4132_v21 = vadd.f32 %v1925_v9, %v1923_v8  ;;  %v2426_v8 = vld [vmem:[#allocation11 + $0x10] sm:$0xff]  ;;  %v2427_v9 = vld [vmem:[#allocation11 + $0x18] sm:$0xff] }
 0x78a   :  { %3455 = vtanh.f32 %v4130_v16 }
 0x78b   :  { %3457 = vtanh.f32 %v4132_v21 }
 0x794   :  { %v3456_v39 = vpop.eup %3455 }
 0x795   :  { %v3458_v29 = vpop.eup %3457  ;;  %v1934_v44 = vmul.f32 %v3456_v39, %v1930_v38  ;;  %v2429_v38 = vld [vmem:[#allocation11 + $0x28] sm:$0xff] }
 0x796   :  { %v1935_v45 = vmul.f32 %v3458_v29, %v1931_v22  ;;  %v2430_v22 = vld [vmem:[#allocation11 + $0x30] sm:$0xff]  ;;  %v2431_v29 = vld [vmem:[#allocation11 + $0x38] sm:$0xff] }
 0x797   :  { %1936 = vst [vmem:[#allocation3 + $0x5] sm:$0x1] %v1934_v44 }
 0x798   :  { %1937 = vst [vmem:[#allocation3 + $0xd] sm:$0x1] %v1935_v45  ;;  %v1944_v52 = vcombine.low %v1934_v44, %v1935_v45  ;;  %v3332_v44 = vpack.c.bf16 %v2431_v29, %v2430_v22  ;;  %v2432_v45 = vld [vmem:[#allocation11 + $0x40] sm:$0xff] }
 0x79a   :  { %v1951_v53 = vrot.slane %v1944_v52, %v3884_v26  ;;  %v2433_v52 = vld [vmem:[#allocation11 + $0x48] sm:$0xff] }
 0x79c   :  { %v1958_v31 = vrot.slane %v1951_v53, %v3884_v26  ;;  %v3335_v53 = vpack.c.bf16 %v2433_v52, %v2432_v45 }
 0x79e   :  { %2025 = vmatmul.mubr.f32.vlgmr.msra.gmra.mrb[16].mxu1 %v1958_v31  ;;  %2096 = vmatmul.mubr.f32.vlgmr.msra.gmra.mrb[18].mxu0 %v1958_v31  ;;  %v2434_v31 = vld [vmem:[#allocation11 + $0x50] sm:$0xff] }
 0x79f   :  { %3261 = vmatpush1.bf16.msra.mxu1 %v3749_v57  ;;  %3293 = vmatpush1.bf16.msra.mxu0 %v3751_v58 }
 0x7a0   :  { %3263 = vmatprep.subr.bf16.mxu1 %v3753_v1  ;;  %3295 = vmatprep.subr.bf16.mxu0 %v3755_v2 }
 0x7a1   :  { %2266 = vmatprep.mubr.f32.mxu1 %v3612_v25  ;;  %2337 = vmatprep.mubr.f32.mxu0 %v3612_v25 }
 0x7a3   :  { %3265 = vmatpush1.bf16.msra.mxu1 %v3759_v6  ;;  %3297 = vmatpush1.bf16.msra.mxu0 %v3761_v7 }
 0x7a4   :  { %3267 = vmatprep.subr.bf16.mxu1 %v3765_v10  ;;  %3299 = vmatprep.subr.bf16.mxu0 %v3767_v11 }
 0x7a7   :  { %3269 = vmatpush1.bf16.msra.mxu1 %v3773_v19  ;;  %3301 = vmatpush1.bf16.msra.mxu0 %v3775_v20 }
 0x7a8   :  { %3271 = vmatprep.subr.bf16.mxu1 %v3779_v23  ;;  %3303 = vmatprep.subr.bf16.mxu0 %v3781_v24 }
 0x7ab   :  { %3273 = vmatpush1.bf16.msra.mxu1 %v3787_v32  ;;  %3305 = vmatpush1.bf16.msra.mxu0 %v3789_v33  ;;  %v1939_v32 = vld [vmem:[#allocation2 + $0x6] ss:$8 sm:$0xf] }
 0x7ac   :  { %3275 = vmatprep.subr.bf16.mxu1 %v3793_v36  ;;  %3307 = vmatprep.subr.bf16.mxu0 %v3795_v37  ;;  %v1941_v33 = vld [vmem:[#allocation2 + $0x26] ss:$8 sm:$0xf] }
 0x7af   :  { %3277 = vmatpush1.bf16.msra.mxu1 %v3799_v46  ;;  %3309 = vmatpush1.bf16.msra.mxu0 %v3801_v47 }
 0x7b0   :  { %3279 = vmatprep.subr.bf16.mxu1 %v3805_v50  ;;  %3311 = vmatprep.subr.bf16.mxu0 %v3807_v51 }
 0x7b3   :  { %3281 = vmatpush1.bf16.msra.mxu1 %v3811_v60  ;;  %3313 = vmatpush1.bf16.msra.mxu0 %v3813_v61 }
 0x7b4   :  { %3283 = vmatprep.subr.bf16.mxu1 %v3817_v0  ;;  %3315 = vmatprep.subr.bf16.mxu0 %v3819_v3 }
 0x7b7   :  { %3285 = vmatpush1.bf16.msra.mxu1 %v3823_v14  ;;  %3317 = vmatpush1.bf16.msra.mxu0 %v3825_v15 }
 0x7b8   :  { %3287 = vmatprep.subr.bf16.mxu1 %v3829_v17  ;;  %3319 = vmatprep.subr.bf16.mxu0 %v3831_v18 }
 0x7bb   :  { %3289 = vmatpush1.bf16.msra.mxu1 %v3835_v27  ;;  %3321 = vmatpush1.bf16.msra.mxu0 %v3837_v28 }
 0x7bc   :  { %3322 = vmatprep.subr.bf16.mxu1 %v3614_v63  ;;  %3346 = vmatprep.subr.bf16.mxu0 %v3614_v63 }
 0x871   :  { %v2026_v57 = vpop.f32.mrb[16].mxu1  ;;  %v2097_v58 = vpop.f32.mrb[18].mxu0 }
 0x872   :  { %v2028_v1 = vpop.f32.mrb[17].mxu1  ;;  %v2099_v2 = vpop.f32.mrb[19].mxu0 }
 0x873   :  { %v2106_v6 = vcombine.low %v2026_v57, %v2028_v1  ;;  %v2107_v7 = vcombine.low %v2097_v58, %v2099_v2  ;;  %v2435_v57 = vld [vmem:[#allocation11 + $0x58] sm:$0xff]  ;;  %v2436_v1 = vld [vmem:[#allocation11 + $0x60] sm:$0xff]  ;;  %v2437_v2 = vld [vmem:[#allocation11 + $0x68] sm:$0xff] }
 0x874   :  { %v3338_v58 = vpack.c.bf16 %v2435_v57, %v2434_v31 }
 0x875   :  { %v2114_v10 = vrot.slane %v2106_v6, %v3884_v26  ;;  %v2121_v11 = vrot.slane %v2107_v7, %v3884_v26  ;;  %v3341_v6 = vpack.c.bf16 %v2437_v2, %v2436_v1  ;;  %v2439_v7 = vld [vmem:[#allocation11 + $0x78] sm:$0xff] }
 0x877   :  { %v2122_v19 = vcombine.low %v2114_v10, %v2121_v11  ;;  %v2123_v20 = vcombine.high %v2114_v10, %v2121_v11 }
 0x879   :  { %v2130_v23 = vrot.slane %v2122_v19, %v3884_v26  ;;  %v2137_v24 = vrot.slane %v2123_v20, %v3884_v26 }
 0x87b   :  { %v2140_v36 = vadd.f32 %v2130_v23, %v1939_v32  ;;  %v2141_v37 = vadd.f32 %v2137_v24, %v1941_v33 }
 0x87d   :  { %v2142_v46 = vmul.f32 0.5, %v2140_v36  ;;  %v2143_v47 = vmul.f32 0.5, %v2141_v37  ;;  %v2152_v50 = vrot.slane %v2140_v36, 3  ;;  %v2153_v51 = vrot.slane %v2141_v37, 3 }
 0x87f   :  { %3459 = vtanh.f32 %v2142_v46 }
 0x880   :  { %3461 = vtanh.f32 %v2143_v47 }
 0x881   :  { %3463 = vtanh.f32 %v2152_v50 }
 0x882   :  { %3465 = vtanh.f32 %v2153_v51  ;;  %v2181_v51 = vld [vmem:[#allocation2 + $0x7] ss:$8 sm:$0xf] }
 0x889   :  { %v3460_v60 = vpop.eup %3459 }
 0x88a   :  { %v3462_v61 = vpop.eup %3461  ;;  %v2146_v0 = vadd.f32 1.0, %v3460_v60  ;;  %v2183_v60 = vld [vmem:[#allocation2 + $0x27] ss:$8 sm:$0xf] }
 0x88b   :  { %v2147_v3 = vadd.f32 1.0, %v3462_v61  ;;  %v3464_v18 = vpop.eup %3463 }
 0x88c   :  { %v2148_v14 = vmul.f32 0.5, %v2146_v0  ;;  %v3466_v28 = vpop.eup %3465 }
 0x88d   :  { %v2149_v15 = vmul.f32 0.5, %v2147_v3 }
 0x88e   :  { %v2160_v17 = vrot.slane %v2148_v14, 1  ;;  %v2166_v34 = vmul.f32 %v3464_v18, %v2148_v14  ;;  %v2172_v48 = vrot.slane %v2148_v14, 2 }
 0x88f   :  { %v2161_v27 = vrot.slane %v2149_v15, 1  ;;  %v2167_v35 = vmul.f32 %v3466_v28, %v2149_v15  ;;  %v2173_v30 = vrot.slane %v2149_v15, 2 }
 0x890   :  { %v2164_v40 = vmul.f32 %v2160_v17, %v4130_v16  ;;  %v3326_v16 = vpack.c.bf16 %v2427_v9, %v2426_v8 }
 0x891   :  { %v2165_v43 = vmul.f32 %v2161_v27, %v4132_v21  ;;  %v2428_v21 = vld [vmem:[#allocation11 + $0x20] sm:$0xff] }
 0x892   :  { %v4176_v41 = vadd.f32 %v2166_v34, %v2164_v40  ;;  %v3329_v39 = vpack.c.bf16 %v2429_v38, %v2428_v21 }
 0x893   :  { %v4178_v42 = vadd.f32 %v2167_v35, %v2165_v43 }
 0x894   :  { %3467 = vtanh.f32 %v4176_v41 }
 0x895   :  { %3469 = vtanh.f32 %v4178_v42 }
 0x89e   :  { %v3468_v49 = vpop.eup %3467 }
 0x89f   :  { %v3470_v54 = vpop.eup %3469  ;;  %v2176_v4 = vmul.f32 %v3468_v49, %v2172_v48 }
 0x8a0   :  { %v2177_v5 = vmul.f32 %v3470_v54, %v2173_v30 }
 0x8a1   :  { %2178 = vst [vmem:[#allocation3 + $0x6] sm:$0x1] %v2176_v4 }
 0x8a2   :  { %2179 = vst [vmem:[#allocation3 + $0xe] sm:$0x1] %v2177_v5  ;;  %v2186_v55 = vcombine.low %v2176_v4, %v2177_v5 }
 0x8a4   :  { %v2193_v56 = vrot.slane %v2186_v55, %v3884_v26 }
 0x8a6   :  { %v2200_v12 = vrot.slane %v2193_v56, %v3884_v26 }
 0x8a8   :  { %2267 = vmatmul.mubr.f32.vlgmr.msra.gmra.mrb[18].mxu1 %v2200_v12  ;;  %2338 = vmatmul.mubr.f32.vlgmr.msra.gmra.mrb[20].mxu0 %v2200_v12 }
 0x8a9   :  { %3324 = vmatpush3.bf16.msra.mxu1 %v3323_v62  ;;  %3348 = vmatpush3.bf16.msra.mxu0 %v3323_v62 }
 0x8aa   :  { %3325 = vmatprep.subr.bf16.mxu1 %v3614_v63  ;;  %3349 = vmatprep.subr.bf16.mxu0 %v3614_v63 }
 0x8ab   :  { %2704 = vmatprep.mubr.msk.f32.mxu1 %vm3615_vm1, %v3612_v25  ;;  %2739 = vmatprep.mubr.msk.f32.mxu0 %vm3615_vm1, %v3612_v25  ;;  %v2438_v25 = vld [vmem:[#allocation11 + $0x70] sm:$0xff] }
 0x8ac   :  { %v3344_v10 = vpack.c.bf16 %v2439_v7, %v2438_v25 }
 0x8ad   :  { %3327 = vmatpush3.bf16.msra.mxu1 %v3326_v16  ;;  %3351 = vmatpush3.bf16.msra.mxu0 %v3326_v16 }
 0x8ae   :  { %3328 = vmatprep.subr.bf16.mxu1 %v3614_v63  ;;  %3352 = vmatprep.subr.bf16.mxu0 %v3614_v63 }
 0x8b1   :  { %3330 = vmatpush3.bf16.msra.mxu1 %v3329_v39  ;;  %3354 = vmatpush3.bf16.msra.mxu0 %v3329_v39 }
 0x8b2   :  { %3331 = vmatprep.subr.bf16.mxu1 %v3614_v63  ;;  %3355 = vmatprep.subr.bf16.mxu0 %v3614_v63 }
 0x8b5   :  { %3333 = vmatpush3.bf16.msra.mxu1 %v3332_v44  ;;  %3357 = vmatpush3.bf16.msra.mxu0 %v3332_v44 }
 0x8b6   :  { %3334 = vmatprep.subr.bf16.mxu1 %v3614_v63  ;;  %3358 = vmatprep.subr.bf16.mxu0 %v3614_v63 }
 0x8b9   :  { %3336 = vmatpush3.bf16.msra.mxu1 %v3335_v53  ;;  %3360 = vmatpush3.bf16.msra.mxu0 %v3335_v53 }
 0x8ba   :  { %3337 = vmatprep.subr.bf16.mxu1 %v3614_v63  ;;  %3361 = vmatprep.subr.bf16.mxu0 %v3614_v63 }
 0x8bd   :  { %3339 = vmatpush3.bf16.msra.mxu1 %v3338_v58  ;;  %3363 = vmatpush3.bf16.msra.mxu0 %v3338_v58 }
 0x8be   :  { %3340 = vmatprep.subr.bf16.mxu1 %v3614_v63  ;;  %3364 = vmatprep.subr.bf16.mxu0 %v3614_v63 }
 0x8c1   :  { %3342 = vmatpush3.bf16.msra.mxu1 %v3341_v6  ;;  %3366 = vmatpush3.bf16.msra.mxu0 %v3341_v6 }
 0x8c2   :  { %3343 = vmatprep.subr.bf16.mxu1 %v3614_v63  ;;  %3367 = vmatprep.subr.bf16.mxu0 %v3614_v63 }
 0x8c5   :  { %3345 = vmatpush3.bf16.msra.mxu1 %v3344_v10  ;;  %3369 = vmatpush3.bf16.msra.mxu0 %v3344_v10 }
 0x97b   :  { %v2268_v11 = vpop.f32.mrb[18].mxu1  ;;  %v2339_v19 = vpop.f32.mrb[20].mxu0 }
 0x97c   :  { %v2270_v20 = vpop.f32.mrb[19].mxu1  ;;  %v2341_v23 = vpop.f32.mrb[21].mxu0 }
 0x97d   :  { %v2348_v24 = vcombine.low %v2268_v11, %v2270_v20  ;;  %v2349_v32 = vcombine.low %v2339_v19, %v2341_v23 }
 0x97f   :  { %v2356_v33 = vrot.slane %v2348_v24, %v3884_v26  ;;  %v2363_v36 = vrot.slane %v2349_v32, %v3884_v26 }
 0x981   :  { %v2364_v37 = vcombine.low %v2356_v33, %v2363_v36  ;;  %v2365_v46 = vcombine.high %v2356_v33, %v2363_v36 }
 0x983   :  { %v2372_v47 = vrot.slane %v2364_v37, %v3884_v26  ;;  %v2379_v50 = vrot.slane %v2365_v46, %v3884_v26 }
 0x985   :  { %v2382_v61 = vadd.f32 %v2372_v47, %v2181_v51  ;;  %v2383_v0 = vadd.f32 %v2379_v50, %v2183_v60 }
 0x987   :  { %v2384_v3 = vmul.f32 0.5, %v2382_v61  ;;  %v2385_v14 = vmul.f32 0.5, %v2383_v0  ;;  %v2394_v15 = vrot.slane %v2382_v61, 3  ;;  %v2395_v17 = vrot.slane %v2383_v0, 3 }
 0x989   :  { %3471 = vtanh.f32 %v2384_v3 }
 0x98a   :  { %3473 = vtanh.f32 %v2385_v14 }
 0x98b   :  { %3475 = vtanh.f32 %v2394_v15 }
 0x98c   :  { %3477 = vtanh.f32 %v2395_v17 }
 0x993   :  { %v3472_v18 = vpop.eup %3471 }
 0x994   :  { %v3474_v27 = vpop.eup %3473  ;;  %v2388_v28 = vadd.f32 1.0, %v3472_v18 }
 0x995   :  { %v2389_v40 = vadd.f32 1.0, %v3474_v27  ;;  %v3476_v26 = vpop.eup %3475 }
 0x996   :  { %v2390_v34 = vmul.f32 0.5, %v2388_v28  ;;  %v3478_v49 = vpop.eup %3477 }
 0x997   :  { %v2391_v43 = vmul.f32 0.5, %v2389_v40 }
 0x998   :  { %v2402_v35 = vrot.slane %v2390_v34, 1  ;;  %v2408_v54 = vmul.f32 %v3476_v26, %v2390_v34  ;;  %v2414_v12 = vrot.slane %v2390_v34, 2 }
 0x999   :  { %v2403_v48 = vrot.slane %v2391_v43, 1  ;;  %v2409_v5 = vmul.f32 %v3478_v49, %v2391_v43  ;;  %v2415_v59 = vrot.slane %v2391_v43, 2 }
 0x99a   :  { %v2406_v30 = vmul.f32 %v2402_v35, %v4176_v41 }
 0x99b   :  { %v2407_v4 = vmul.f32 %v2403_v48, %v4178_v42  ;;  %v2625_v42 = vld [vmem:[%s4208_s7] ss:$0 sm:$0xff] }
 0x99c   :  { %v2410_v55 = vadd.f32 %v2408_v54, %v2406_v30 }
 0x99d   :  { %v2411_v56 = vadd.f32 %v2409_v5, %v2407_v4 }
 0x99e   :  { %3479 = vtanh.f32 %v2410_v55 }
 0x99f   :  { %3481 = vtanh.f32 %v2411_v56 }
 0x9a8   :  { %v3480_v13 = vpop.eup %3479 }
 0x9a9   :  { %v3482_v62 = vpop.eup %3481  ;;  %v2418_v63 = vmul.f32 %v3480_v13, %v2414_v12 }
 0x9aa   :  { %v2419_v8 = vmul.f32 %v3482_v62, %v2415_v59 }
 0x9ab   :  { %2420 = vst [vmem:[#allocation3 + $0x7] sm:$0x1] %v2418_v63 }
 0x9ac   :  { %2421 = vst [vmem:[#allocation3 + $0xf] sm:$0x1] %v2419_v8 }
 0x9b2   :  { %v2422_v9 = vld [vmem:[#allocation3] sm:$0xff] }
 0x9b3   :  { %3483 = vtanh.f32 %v2422_v9  ;;  %v2519_v16 = vld [vmem:[#allocation3 + $0x8] sm:$0xff] }
 0x9b4   :  { %3485 = vtanh.f32 %v2519_v16 }
 0x9bd   :  { %v3484_v41 = vpop.eup %3483 }
 0x9be   :  { %v3486_v21 = vpop.eup %3485  ;;  %2705 = vmatmul.mubr.f32.vlgmr.msra.gmra.mrb[20].mxu1 %v3484_v41 }
 0x9bf   :  { %2740 = vmatmul.mubr.f32.vlgmr.msra.gmra.mrb[22].mxu0 %v3486_v21 }
 0xa91   :  { %v2513_v38 = vpop.f32.mrb[20].mxu1 }
 0xa92   :  { %v2514_v39 = vadd.f32 %v2625_v42, %v2513_v38  ;;  %v2610_v22 = vpop.f32.mrb[22].mxu0  ;;  %v2706_v29 = vpop.f32.mrb[21].mxu1 }
 0xa93   :  { %v2611_v44 = vadd.f32 %v2625_v42, %v2610_v22  ;;  %v2741_v45 = vpop.f32.mrb[23].mxu0 }
 0xa94   :  { %2517 = vst [vmem:[%s4209_s8] sm:$0xff] %v2514_v39 }
 0xa95   :  { %2614 = vst [vmem:[%s4209_s8 + $0x8] sm:$0xff] %v2611_v44 }
 0xa96   :  { %2619 = vsyncpa [#allocation5], 1 }
 0xa97   :  { %2620 = vsyncpa [#allocation7], 1 }
 0xa98   :  { %2621 = vsyncpa [#allocation10], 1 }

</bundles_post_ra>
